<compile_context>
chip_gen: v7x
topology: tpu7x:2x2x1
jax: 0.10.0
libtpu: 0.0.40
codegen_flags: <defaults>
</compile_context>

<pallas_src>
import math

import jax
import jax.numpy as jnp
from jax import lax
from jax.experimental import pallas as pl
from jax.experimental.pallas import tpu as pltpu


# ----------------------------- Pallas kernel ------------------------------ #
def _lstm_fc_kernel(gx0_ref,          # (T, Bb, 4H)  precomputed x@Wih0 + b0, f32
                    whh0_ref,         # (H, 4H)      layer-0 recurrent weights
                    w1_ref,           # (2H, 4H)     layer-1 [Wih1; Whh1] fused
                    b1_ref,           # (1, 4H)      layer-1 fused bias
                    wfc_ref,          # (H, V)
                    bfc_ref,          # (1, V)
                    out_ref,          # (Bb, V)      logits for the last timestep
                    hn_ref,           # (L, Bb, H)   final hidden state
                    cn_ref):          # (L, Bb, H)   final cell state
    T, Bb, G = gx0_ref.shape
    H = whh0_ref.shape[0]
    mm_dtype = whh0_ref.dtype

    # Hoist weight / bias loads and the bias broadcast out of the loop
    # (JAX does not CSE broadcast_in_dim inside loop bodies).
    whh0 = whh0_ref[...]
    w1 = w1_ref[...]
    b1b = jnp.broadcast_to(b1_ref[...], (Bb, G))

    def gate_math(gates, c):
        # Full 128-lane EUP ops, then slice the activated result (i, f, g, o order).
        sg = jax.nn.sigmoid(gates)
        th = jnp.tanh(gates)
        i_g = sg[:, 0 * H:1 * H]
        f_g = sg[:, 1 * H:2 * H]
        g_g = th[:, 2 * H:3 * H]
        o_g = sg[:, 3 * H:4 * H]
        c_new = f_g * c + i_g * g_g
        h_new = o_g * jnp.tanh(c_new)
        return h_new, c_new

    zeros_bh = jnp.zeros((Bb, H), jnp.float32)

    def step(t, carry):
        h0, c0, h1, c1 = carry
        # Layer 0: input projection was hoisted; only the recurrent dot remains.
        g0 = gx0_ref[t] + jnp.dot(h0.astype(mm_dtype), whh0,
                                  preferred_element_type=jnp.float32)
        h0, c0 = gate_math(g0, c0)
        # Layer 1 (fused with layer 0 per timestep): one MXU dot on [h0 ; h1].
        xh = jnp.concatenate([h0, h1], axis=-1).astype(mm_dtype)   # (Bb, 2H)
        g1 = jnp.dot(xh, w1, preferred_element_type=jnp.float32) + b1b
        h1, c1 = gate_math(g1, c1)
        return (h0, c0, h1, c1)

    h0, c0, h1, c1 = lax.fori_loop(
        0, T, step, (zeros_bh, zeros_bh, zeros_bh, zeros_bh), unroll=True)

    hn_ref[0] = h0
    hn_ref[1] = h1
    cn_ref[0] = c0
    cn_ref[1] = c1

    # FC on the last timestep of the top layer.
    out_ref[...] = (jnp.dot(h1.astype(wfc_ref.dtype), wfc_ref[...],
                            preferred_element_type=jnp.float32)
                    + bfc_ref[...]).astype(out_ref.dtype)


# ------------------------------- wrapper ----------------------------------- #
def music_lstm_forward(x_ids, params, *, block_b=None, param_dtype=jnp.float32):
    """x_ids: int32 (B, T) token ids.  Returns (logits (B, V), (h_n, c_n)).

    param_dtype=jnp.bfloat16 is the production choice on v6e/v7x (keeps f32
    accumulation and f32 h/c state); defaults to f32 so validation is tight.
    """
    emb = params["embedding"]                          # (V, E)
    B, T = x_ids.shape
    H = params["w_hh0"].shape[1]
    V = emb.shape[0]
    L = 2

    # Embedding gather directly in time-major order: (T, B, E).  Glue op.
    x_tm = jnp.take(emb, x_ids.T, axis=0)

    # Hoisted layer-0 input projection: one batched (T*B, E) @ (E, 4H) matmul
    # (review-endorsed wrapper hoist), bias pre-fused.  Kept in f32.
    wih0 = params["w_ih0"].T.astype(param_dtype)                     # (E, 4H)
    b0 = (params["b_ih0"] + params["b_hh0"]).reshape(1, 1, 4 * H)
    gx0 = jnp.einsum("tbe,eg->tbg", x_tm.astype(param_dtype), wih0,
                     preferred_element_type=jnp.float32) + b0        # (T, B, 4H)

    whh0 = params["w_hh0"].T.astype(param_dtype)                     # (H, 4H)
    w1 = jnp.concatenate([params["w_ih1"].T, params["w_hh1"].T],
                         axis=0).astype(param_dtype)                 # (2H, 4H)
    b1 = (params["b_ih1"] + params["b_hh1"]).reshape(1, 4 * H)
    wfc = params["w_fc"].T.astype(param_dtype)                       # (H, V)
    bfc = params["b_fc"].reshape(1, V)

    if block_b is None:
        block_b = B                     # at toy sizes: one batch block
    nb = pl.cdiv(B, block_b)

    grid_spec = pltpu.PrefetchScalarGridSpec(
        num_scalar_prefetch=0,
        grid=(nb,),                     # batch-parallel axis (v7x: 2 TCs)
        in_specs=[
            pl.BlockSpec((T, block_b, 4 * H), lambda i: (0, i, 0)),
            pl.BlockSpec((H, 4 * H), lambda i: (0, 0)),
            pl.BlockSpec((2 * H, 4 * H), lambda i: (0, 0)),
            pl.BlockSpec((1, 4 * H), lambda i: (0, 0)),
            pl.BlockSpec((H, V), lambda i: (0, 0)),
            pl.BlockSpec((1, V), lambda i: (0, 0)),
        ],
        out_specs=(
            pl.BlockSpec((block_b, V), lambda i: (i, 0)),
            pl.BlockSpec((L, block_b, H), lambda i: (0, i, 0)),
            pl.BlockSpec((L, block_b, H), lambda i: (0, i, 0)),
        ),
    )

    out, h_n, c_n = pl.pallas_call(
        _lstm_fc_kernel,
        out_shape=(
            jax.ShapeDtypeStruct((B, V), jnp.float32),
            jax.ShapeDtypeStruct((L, B, H), jnp.float32),
            jax.ShapeDtypeStruct((L, B, H), jnp.float32),
        ),
        grid_spec=grid_spec,
        compiler_params=pltpu.CompilerParams(
            dimension_semantics=("parallel",)),
    )(gx0, whh0, w1, b1, wfc, bfc)
    return out, (h_n, c_n)


# --------------------------- pure-JAX reference ---------------------------- #
def _reference_forward(x_ids, params):
    emb = params["embedding"]
    x = jnp.take(emb, x_ids, axis=0)               # (B, T, E)
    B = x.shape[0]
    H = params["w_hh0"].shape[1]

    def run_layer(seq, wih, whh, b_ih, b_hh):
        def step(carry, x_t):
            h, c = carry
            gates = x_t @ wih.T + b_ih + h @ whh.T + b_hh
            i_g = jax.nn.sigmoid(gates[:, 0 * H:1 * H])
            f_g = jax.nn.sigmoid(gates[:, 1 * H:2 * H])
            g_g = jnp.tanh(gates[:, 2 * H:3 * H])
            o_g = jax.nn.sigmoid(gates[:, 3 * H:4 * H])
            c = f_g * c + i_g * g_g
            h = o_g * jnp.tanh(c)
            return (h, c), h
        (h, c), ys = lax.scan(step,
                              (jnp.zeros((B, H)), jnp.zeros((B, H))),
                              jnp.transpose(seq, (1, 0, 2)))
        return jnp.transpose(ys, (1, 0, 2)), h, c

    y0, h0, c0 = run_layer(x, params["w_ih0"], params["w_hh0"],
                           params["b_ih0"], params["b_hh0"])
    y1, h1, c1 = run_layer(y0, params["w_ih1"], params["w_hh1"],
                           params["b_ih1"], params["b_hh1"])
    out = y1[:, -1, :] @ params["w_fc"].T + params["b_fc"]
    return out, (jnp.stack([h0, h1]), jnp.stack([c0, c1]))


# ---------------------------------- main ----------------------------------- #
if __name__ == "__main__":
    # Small shapes consistent with the module.
    VOCAB, EMBED, HIDDEN, LAYERS = 64, 32, 32, 2
    BATCH, SEQ = 2, 8

    key = jax.random.PRNGKey(0)
    ks = jax.random.split(key, 12)
    std = 1.0 / math.sqrt(HIDDEN)

    def u(k, shape):
        return jax.random.uniform(k, shape, jnp.float32, -std, std)

    params = {
        "embedding": jax.random.normal(ks[0], (VOCAB, EMBED), jnp.float32),
        # layer 0
        "w_ih0": u(ks[1], (4 * HIDDEN, EMBED)),
        "w_hh0": u(ks[2], (4 * HIDDEN, HIDDEN)),
        "b_ih0": u(ks[3], (4 * HIDDEN,)),
        "b_hh0": u(ks[4], (4 * HIDDEN,)),
        # layer 1
        "w_ih1": u(ks[5], (4 * HIDDEN, HIDDEN)),
        "w_hh1": u(ks[6], (4 * HIDDEN, HIDDEN)),
        "b_ih1": u(ks[7], (4 * HIDDEN,)),
        "b_hh1": u(ks[8], (4 * HIDDEN,)),
        # fc
        "w_fc": u(ks[9], (VOCAB, HIDDEN)),
        "b_fc": u(ks[10], (VOCAB,)),
    }

    x_ids = jax.random.randint(ks[11], (BATCH, SEQ), 0, VOCAB, dtype=jnp.int32)

    out, (h_n, c_n) = jax.jit(music_lstm_forward)(x_ids, params)
    jax.block_until_ready((out, h_n, c_n))

    ref_out, (ref_h, ref_c) = _reference_forward(x_ids, params)
    assert out.shape == (BATCH, VOCAB)
    assert h_n.shape == (LAYERS, BATCH, HIDDEN) and c_n.shape == (LAYERS, BATCH, HIDDEN)
    assert jnp.allclose(out, ref_out, rtol=1e-4, atol=1e-4)
    assert jnp.allclose(h_n, ref_h, rtol=1e-4, atol=1e-4)
    assert jnp.allclose(c_n, ref_c, rtol=1e-4, atol=1e-4)

    print("KERNEL_OK")
</pallas_src>

<mosaic_0001>
module attributes {stable_mosaic.version = 11 : i64} {
  func.func @_lstm_fc_kernel(%arg0: i32, %arg1: memref<8x2x128xf32, #tpu.memory_space<vmem>>, %arg2: memref<32x128xf32, #tpu.memory_space<vmem>>, %arg3: memref<64x128xf32, #tpu.memory_space<vmem>>, %arg4: memref<1x128xf32, #tpu.memory_space<vmem>>, %arg5: memref<32x64xf32, #tpu.memory_space<vmem>>, %arg6: memref<1x64xf32, #tpu.memory_space<vmem>>, %arg7: memref<2x64xf32, #tpu.memory_space<vmem>>, %arg8: memref<2x2x32xf32, #tpu.memory_space<vmem>>, %arg9: memref<2x2x32xf32, #tpu.memory_space<vmem>>) attributes {dimension_semantics = [#tpu.dimension_semantics<parallel>], iteration_bounds = array<i64: 1>, scalar_prefetch = 0 : i64, scratch_operands = 0 : i64, tpu.core_type = #tpu.core_type<tc>, window_params = [{transform_indices = @transform_0, window_bounds = array<i64: 8, 2, 128>}, {pipeline_mode = #tpu.pipeline_mode<synchronous>, transform_indices = @transform_1, window_bounds = array<i64: 32, 128>}, {pipeline_mode = #tpu.pipeline_mode<synchronous>, transform_indices = @transform_2, window_bounds = array<i64: 64, 128>}, {pipeline_mode = #tpu.pipeline_mode<synchronous>, transform_indices = @transform_3, window_bounds = array<i64: 1, 128>}, {pipeline_mode = #tpu.pipeline_mode<synchronous>, transform_indices = @transform_4, window_bounds = array<i64: 32, 64>}, {pipeline_mode = #tpu.pipeline_mode<synchronous>, transform_indices = @transform_5, window_bounds = array<i64: 1, 64>}, {transform_indices = @transform_6, window_bounds = array<i64: 2, 64>}, {transform_indices = @transform_7, window_bounds = array<i64: 2, 2, 32>}, {transform_indices = @transform_8, window_bounds = array<i64: 2, 2, 32>}]} {
    %c0 = arith.constant 0 : index
    %c0_0 = arith.constant 0 : index
    %0 = vector.load %arg2[%c0, %c0_0] : memref<32x128xf32, #tpu.memory_space<vmem>>, vector<32x128xf32>
    %c0_1 = arith.constant 0 : index
    %c0_2 = arith.constant 0 : index
    %1 = vector.load %arg3[%c0_1, %c0_2] : memref<64x128xf32, #tpu.memory_space<vmem>>, vector<64x128xf32>
    %c0_3 = arith.constant 0 : index
    %c0_4 = arith.constant 0 : index
    %2 = vector.load %arg4[%c0_3, %c0_4] : memref<1x128xf32, #tpu.memory_space<vmem>>, vector<1x128xf32>
    %3 = vector.shape_cast %2 : vector<1x128xf32> to vector<1x128xf32>
    %4 = vector.broadcast %3 : vector<1x128xf32> to vector<2x128xf32>
    %cst = arith.constant 0.000000e+00 : f32
    %5 = vector.broadcast %cst : f32 to vector<2x32xf32>
    %c0_i32 = arith.constant 0 : i32
    %6 = arith.index_cast %c0_i32 : i32 to index
    %c0_5 = arith.constant 0 : index
    %c0_6 = arith.constant 0 : index
    %7 = vector.load %arg1[%6, %c0_5, %c0_6] : memref<8x2x128xf32, #tpu.memory_space<vmem>>, vector<1x2x128xf32>
    %8 = vector.shape_cast %7 : vector<1x2x128xf32> to vector<2x128xf32>
    %cst_7 = arith.constant dense<0.000000e+00> : vector<2x128xf32>
    %9 = tpu.matmul %5, %0, %cst_7 {dimension_numbers = #tpu.dot_dimension_numbers<[1], [0], [0], [1], [0, 0, 1, 1], [], []>} : vector<2x32xf32>, vector<32x128xf32>, vector<2x128xf32> -> vector<2x128xf32>
    %10 = arith.addf %8, %9 : vector<2x128xf32>
    %11 = arith.negf %10 : vector<2x128xf32>
    %12 = math.exp %11 : vector<2x128xf32>
    %cst_8 = arith.constant 1.000000e+00 : f32
    %13 = vector.broadcast %cst_8 : f32 to vector<2x128xf32>
    %14 = arith.addf %13, %12 : vector<2x128xf32>
    %15 = arith.divf %13, %14 : vector<2x128xf32>
    %16 = math.tanh %10 : vector<2x128xf32>
    %17 = vector.extract_strided_slice %15 {offsets = [0, 0], sizes = [2, 32], strides = [1, 1]} : vector<2x128xf32> to vector<2x32xf32>
    %18 = vector.extract_strided_slice %15 {offsets = [0, 32], sizes = [2, 32], strides = [1, 1]} : vector<2x128xf32> to vector<2x32xf32>
    %19 = vector.extract_strided_slice %16 {offsets = [0, 64], sizes = [2, 32], strides = [1, 1]} : vector<2x128xf32> to vector<2x32xf32>
    %20 = vector.extract_strided_slice %15 {offsets = [0, 96], sizes = [2, 32], strides = [1, 1]} : vector<2x128xf32> to vector<2x32xf32>
    %21 = arith.mulf %18, %5 : vector<2x32xf32>
    %22 = arith.mulf %17, %19 : vector<2x32xf32>
    %23 = arith.addf %21, %22 : vector<2x32xf32>
    %24 = math.tanh %23 : vector<2x32xf32>
    %25 = arith.mulf %20, %24 : vector<2x32xf32>
    %26 = tpu.concatenate %25, %5 in 1 : vector<2x32xf32>, vector<2x32xf32> -> vector<2x64xf32>
    %cst_9 = arith.constant dense<0.000000e+00> : vector<2x128xf32>
    %27 = tpu.matmul %26, %1, %cst_9 {dimension_numbers = #tpu.dot_dimension_numbers<[1], [0], [0], [1], [0, 0, 1, 1], [], []>} : vector<2x64xf32>, vector<64x128xf32>, vector<2x128xf32> -> vector<2x128xf32>
    %28 = arith.addf %27, %4 : vector<2x128xf32>
    %29 = arith.negf %28 : vector<2x128xf32>
    %30 = math.exp %29 : vector<2x128xf32>
    %cst_10 = arith.constant 1.000000e+00 : f32
    %31 = vector.broadcast %cst_10 : f32 to vector<2x128xf32>
    %32 = arith.addf %31, %30 : vector<2x128xf32>
    %33 = arith.divf %31, %32 : vector<2x128xf32>
    %34 = math.tanh %28 : vector<2x128xf32>
    %35 = vector.extract_strided_slice %33 {offsets = [0, 0], sizes = [2, 32], strides = [1, 1]} : vector<2x128xf32> to vector<2x32xf32>
    %36 = vector.extract_strided_slice %33 {offsets = [0, 32], sizes = [2, 32], strides = [1, 1]} : vector<2x128xf32> to vector<2x32xf32>
    %37 = vector.extract_strided_slice %34 {offsets = [0, 64], sizes = [2, 32], strides = [1, 1]} : vector<2x128xf32> to vector<2x32xf32>
    %38 = vector.extract_strided_slice %33 {offsets = [0, 96], sizes = [2, 32], strides = [1, 1]} : vector<2x128xf32> to vector<2x32xf32>
    %39 = arith.mulf %36, %5 : vector<2x32xf32>
    %40 = arith.mulf %35, %37 : vector<2x32xf32>
    %41 = arith.addf %39, %40 : vector<2x32xf32>
    %42 = math.tanh %41 : vector<2x32xf32>
    %43 = arith.mulf %38, %42 : vector<2x32xf32>
    %c1_i32 = arith.constant 1 : i32
    %44 = arith.index_cast %c1_i32 : i32 to index
    %c0_11 = arith.constant 0 : index
    %c0_12 = arith.constant 0 : index
    %45 = vector.load %arg1[%44, %c0_11, %c0_12] : memref<8x2x128xf32, #tpu.memory_space<vmem>>, vector<1x2x128xf32>
    %46 = vector.shape_cast %45 : vector<1x2x128xf32> to vector<2x128xf32>
    %cst_13 = arith.constant dense<0.000000e+00> : vector<2x128xf32>
    %47 = tpu.matmul %25, %0, %cst_13 {dimension_numbers = #tpu.dot_dimension_numbers<[1], [0], [0], [1], [0, 0, 1, 1], [], []>} : vector<2x32xf32>, vector<32x128xf32>, vector<2x128xf32> -> vector<2x128xf32>
    %48 = arith.addf %46, %47 : vector<2x128xf32>
    %49 = arith.negf %48 : vector<2x128xf32>
    %50 = math.exp %49 : vector<2x128xf32>
    %cst_14 = arith.constant 1.000000e+00 : f32
    %51 = vector.broadcast %cst_14 : f32 to vector<2x128xf32>
    %52 = arith.addf %51, %50 : vector<2x128xf32>
    %53 = arith.divf %51, %52 : vector<2x128xf32>
    %54 = math.tanh %48 : vector<2x128xf32>
    %55 = vector.extract_strided_slice %53 {offsets = [0, 0], sizes = [2, 32], strides = [1, 1]} : vector<2x128xf32> to vector<2x32xf32>
    %56 = vector.extract_strided_slice %53 {offsets = [0, 32], sizes = [2, 32], strides = [1, 1]} : vector<2x128xf32> to vector<2x32xf32>
    %57 = vector.extract_strided_slice %54 {offsets = [0, 64], sizes = [2, 32], strides = [1, 1]} : vector<2x128xf32> to vector<2x32xf32>
    %58 = vector.extract_strided_slice %53 {offsets = [0, 96], sizes = [2, 32], strides = [1, 1]} : vector<2x128xf32> to vector<2x32xf32>
    %59 = arith.mulf %56, %23 : vector<2x32xf32>
    %60 = arith.mulf %55, %57 : vector<2x32xf32>
    %61 = arith.addf %59, %60 : vector<2x32xf32>
    %62 = math.tanh %61 : vector<2x32xf32>
    %63 = arith.mulf %58, %62 : vector<2x32xf32>
    %64 = tpu.concatenate %63, %43 in 1 : vector<2x32xf32>, vector<2x32xf32> -> vector<2x64xf32>
    %cst_15 = arith.constant dense<0.000000e+00> : vector<2x128xf32>
    %65 = tpu.matmul %64, %1, %cst_15 {dimension_numbers = #tpu.dot_dimension_numbers<[1], [0], [0], [1], [0, 0, 1, 1], [], []>} : vector<2x64xf32>, vector<64x128xf32>, vector<2x128xf32> -> vector<2x128xf32>
    %66 = arith.addf %65, %4 : vector<2x128xf32>
    %67 = arith.negf %66 : vector<2x128xf32>
    %68 = math.exp %67 : vector<2x128xf32>
    %cst_16 = arith.constant 1.000000e+00 : f32
    %69 = vector.broadcast %cst_16 : f32 to vector<2x128xf32>
    %70 = arith.addf %69, %68 : vector<2x128xf32>
    %71 = arith.divf %69, %70 : vector<2x128xf32>
    %72 = math.tanh %66 : vector<2x128xf32>
    %73 = vector.extract_strided_slice %71 {offsets = [0, 0], sizes = [2, 32], strides = [1, 1]} : vector<2x128xf32> to vector<2x32xf32>
    %74 = vector.extract_strided_slice %71 {offsets = [0, 32], sizes = [2, 32], strides = [1, 1]} : vector<2x128xf32> to vector<2x32xf32>
    %75 = vector.extract_strided_slice %72 {offsets = [0, 64], sizes = [2, 32], strides = [1, 1]} : vector<2x128xf32> to vector<2x32xf32>
    %76 = vector.extract_strided_slice %71 {offsets = [0, 96], sizes = [2, 32], strides = [1, 1]} : vector<2x128xf32> to vector<2x32xf32>
    %77 = arith.mulf %74, %41 : vector<2x32xf32>
    %78 = arith.mulf %73, %75 : vector<2x32xf32>
    %79 = arith.addf %77, %78 : vector<2x32xf32>
    %80 = math.tanh %79 : vector<2x32xf32>
    %81 = arith.mulf %76, %80 : vector<2x32xf32>
    %c2_i32 = arith.constant 2 : i32
    %82 = arith.index_cast %c2_i32 : i32 to index
    %c0_17 = arith.constant 0 : index
    %c0_18 = arith.constant 0 : index
    %83 = vector.load %arg1[%82, %c0_17, %c0_18] : memref<8x2x128xf32, #tpu.memory_space<vmem>>, vector<1x2x128xf32>
    %84 = vector.shape_cast %83 : vector<1x2x128xf32> to vector<2x128xf32>
    %cst_19 = arith.constant dense<0.000000e+00> : vector<2x128xf32>
    %85 = tpu.matmul %63, %0, %cst_19 {dimension_numbers = #tpu.dot_dimension_numbers<[1], [0], [0], [1], [0, 0, 1, 1], [], []>} : vector<2x32xf32>, vector<32x128xf32>, vector<2x128xf32> -> vector<2x128xf32>
    %86 = arith.addf %84, %85 : vector<2x128xf32>
    %87 = arith.negf %86 : vector<2x128xf32>
    %88 = math.exp %87 : vector<2x128xf32>
    %cst_20 = arith.constant 1.000000e+00 : f32
    %89 = vector.broadcast %cst_20 : f32 to vector<2x128xf32>
    %90 = arith.addf %89, %88 : vector<2x128xf32>
    %91 = arith.divf %89, %90 : vector<2x128xf32>
    %92 = math.tanh %86 : vector<2x128xf32>
    %93 = vector.extract_strided_slice %91 {offsets = [0, 0], sizes = [2, 32], strides = [1, 1]} : vector<2x128xf32> to vector<2x32xf32>
    %94 = vector.extract_strided_slice %91 {offsets = [0, 32], sizes = [2, 32], strides = [1, 1]} : vector<2x128xf32> to vector<2x32xf32>
    %95 = vector.extract_strided_slice %92 {offsets = [0, 64], sizes = [2, 32], strides = [1, 1]} : vector<2x128xf32> to vector<2x32xf32>
    %96 = vector.extract_strided_slice %91 {offsets = [0, 96], sizes = [2, 32], strides = [1, 1]} : vector<2x128xf32> to vector<2x32xf32>
    %97 = arith.mulf %94, %61 : vector<2x32xf32>
    %98 = arith.mulf %93, %95 : vector<2x32xf32>
    %99 = arith.addf %97, %98 : vector<2x32xf32>
    %100 = math.tanh %99 : vector<2x32xf32>
    %101 = arith.mulf %96, %100 : vector<2x32xf32>
    %102 = tpu.concatenate %101, %81 in 1 : vector<2x32xf32>, vector<2x32xf32> -> vector<2x64xf32>
    %cst_21 = arith.constant dense<0.000000e+00> : vector<2x128xf32>
    %103 = tpu.matmul %102, %1, %cst_21 {dimension_numbers = #tpu.dot_dimension_numbers<[1], [0], [0], [1], [0, 0, 1, 1], [], []>} : vector<2x64xf32>, vector<64x128xf32>, vector<2x128xf32> -> vector<2x128xf32>
    %104 = arith.addf %103, %4 : vector<2x128xf32>
    %105 = arith.negf %104 : vector<2x128xf32>
    %106 = math.exp %105 : vector<2x128xf32>
    %cst_22 = arith.constant 1.000000e+00 : f32
    %107 = vector.broadcast %cst_22 : f32 to vector<2x128xf32>
    %108 = arith.addf %107, %106 : vector<2x128xf32>
    %109 = arith.divf %107, %108 : vector<2x128xf32>
    %110 = math.tanh %104 : vector<2x128xf32>
    %111 = vector.extract_strided_slice %109 {offsets = [0, 0], sizes = [2, 32], strides = [1, 1]} : vector<2x128xf32> to vector<2x32xf32>
    %112 = vector.extract_strided_slice %109 {offsets = [0, 32], sizes = [2, 32], strides = [1, 1]} : vector<2x128xf32> to vector<2x32xf32>
    %113 = vector.extract_strided_slice %110 {offsets = [0, 64], sizes = [2, 32], strides = [1, 1]} : vector<2x128xf32> to vector<2x32xf32>
    %114 = vector.extract_strided_slice %109 {offsets = [0, 96], sizes = [2, 32], strides = [1, 1]} : vector<2x128xf32> to vector<2x32xf32>
    %115 = arith.mulf %112, %79 : vector<2x32xf32>
    %116 = arith.mulf %111, %113 : vector<2x32xf32>
    %117 = arith.addf %115, %116 : vector<2x32xf32>
    %118 = math.tanh %117 : vector<2x32xf32>
    %119 = arith.mulf %114, %118 : vector<2x32xf32>
    %c3_i32 = arith.constant 3 : i32
    %120 = arith.index_cast %c3_i32 : i32 to index
    %c0_23 = arith.constant 0 : index
    %c0_24 = arith.constant 0 : index
    %121 = vector.load %arg1[%120, %c0_23, %c0_24] : memref<8x2x128xf32, #tpu.memory_space<vmem>>, vector<1x2x128xf32>
    %122 = vector.shape_cast %121 : vector<1x2x128xf32> to vector<2x128xf32>
    %cst_25 = arith.constant dense<0.000000e+00> : vector<2x128xf32>
    %123 = tpu.matmul %101, %0, %cst_25 {dimension_numbers = #tpu.dot_dimension_numbers<[1], [0], [0], [1], [0, 0, 1, 1], [], []>} : vector<2x32xf32>, vector<32x128xf32>, vector<2x128xf32> -> vector<2x128xf32>
    %124 = arith.addf %122, %123 : vector<2x128xf32>
    %125 = arith.negf %124 : vector<2x128xf32>
    %126 = math.exp %125 : vector<2x128xf32>
    %cst_26 = arith.constant 1.000000e+00 : f32
    %127 = vector.broadcast %cst_26 : f32 to vector<2x128xf32>
    %128 = arith.addf %127, %126 : vector<2x128xf32>
    %129 = arith.divf %127, %128 : vector<2x128xf32>
    %130 = math.tanh %124 : vector<2x128xf32>
    %131 = vector.extract_strided_slice %129 {offsets = [0, 0], sizes = [2, 32], strides = [1, 1]} : vector<2x128xf32> to vector<2x32xf32>
    %132 = vector.extract_strided_slice %129 {offsets = [0, 32], sizes = [2, 32], strides = [1, 1]} : vector<2x128xf32> to vector<2x32xf32>
    %133 = vector.extract_strided_slice %130 {offsets = [0, 64], sizes = [2, 32], strides = [1, 1]} : vector<2x128xf32> to vector<2x32xf32>
    %134 = vector.extract_strided_slice %129 {offsets = [0, 96], sizes = [2, 32], strides = [1, 1]} : vector<2x128xf32> to vector<2x32xf32>
    %135 = arith.mulf %132, %99 : vector<2x32xf32>
    %136 = arith.mulf %131, %133 : vector<2x32xf32>
    %137 = arith.addf %135, %136 : vector<2x32xf32>
    %138 = math.tanh %137 : vector<2x32xf32>
    %139 = arith.mulf %134, %138 : vector<2x32xf32>
    %140 = tpu.concatenate %139, %119 in 1 : vector<2x32xf32>, vector<2x32xf32> -> vector<2x64xf32>
    %cst_27 = arith.constant dense<0.000000e+00> : vector<2x128xf32>
    %141 = tpu.matmul %140, %1, %cst_27 {dimension_numbers = #tpu.dot_dimension_numbers<[1], [0], [0], [1], [0, 0, 1, 1], [], []>} : vector<2x64xf32>, vector<64x128xf32>, vector<2x128xf32> -> vector<2x128xf32>
    %142 = arith.addf %141, %4 : vector<2x128xf32>
    %143 = arith.negf %142 : vector<2x128xf32>
    %144 = math.exp %143 : vector<2x128xf32>
    %cst_28 = arith.constant 1.000000e+00 : f32
    %145 = vector.broadcast %cst_28 : f32 to vector<2x128xf32>
    %146 = arith.addf %145, %144 : vector<2x128xf32>
    %147 = arith.divf %145, %146 : vector<2x128xf32>
    %148 = math.tanh %142 : vector<2x128xf32>
    %149 = vector.extract_strided_slice %147 {offsets = [0, 0], sizes = [2, 32], strides = [1, 1]} : vector<2x128xf32> to vector<2x32xf32>
    %150 = vector.extract_strided_slice %147 {offsets = [0, 32], sizes = [2, 32], strides = [1, 1]} : vector<2x128xf32> to vector<2x32xf32>
    %151 = vector.extract_strided_slice %148 {offsets = [0, 64], sizes = [2, 32], strides = [1, 1]} : vector<2x128xf32> to vector<2x32xf32>
    %152 = vector.extract_strided_slice %147 {offsets = [0, 96], sizes = [2, 32], strides = [1, 1]} : vector<2x128xf32> to vector<2x32xf32>
    %153 = arith.mulf %150, %117 : vector<2x32xf32>
    %154 = arith.mulf %149, %151 : vector<2x32xf32>
    %155 = arith.addf %153, %154 : vector<2x32xf32>
    %156 = math.tanh %155 : vector<2x32xf32>
    %157 = arith.mulf %152, %156 : vector<2x32xf32>
    %c4_i32 = arith.constant 4 : i32
    %158 = arith.index_cast %c4_i32 : i32 to index
    %c0_29 = arith.constant 0 : index
    %c0_30 = arith.constant 0 : index
    %159 = vector.load %arg1[%158, %c0_29, %c0_30] : memref<8x2x128xf32, #tpu.memory_space<vmem>>, vector<1x2x128xf32>
    %160 = vector.shape_cast %159 : vector<1x2x128xf32> to vector<2x128xf32>
    %cst_31 = arith.constant dense<0.000000e+00> : vector<2x128xf32>
    %161 = tpu.matmul %139, %0, %cst_31 {dimension_numbers = #tpu.dot_dimension_numbers<[1], [0], [0], [1], [0, 0, 1, 1], [], []>} : vector<2x32xf32>, vector<32x128xf32>, vector<2x128xf32> -> vector<2x128xf32>
    %162 = arith.addf %160, %161 : vector<2x128xf32>
    %163 = arith.negf %162 : vector<2x128xf32>
    %164 = math.exp %163 : vector<2x128xf32>
    %cst_32 = arith.constant 1.000000e+00 : f32
    %165 = vector.broadcast %cst_32 : f32 to vector<2x128xf32>
    %166 = arith.addf %165, %164 : vector<2x128xf32>
    %167 = arith.divf %165, %166 : vector<2x128xf32>
    %168 = math.tanh %162 : vector<2x128xf32>
    %169 = vector.extract_strided_slice %167 {offsets = [0, 0], sizes = [2, 32], strides = [1, 1]} : vector<2x128xf32> to vector<2x32xf32>
    %170 = vector.extract_strided_slice %167 {offsets = [0, 32], sizes = [2, 32], strides = [1, 1]} : vector<2x128xf32> to vector<2x32xf32>
    %171 = vector.extract_strided_slice %168 {offsets = [0, 64], sizes = [2, 32], strides = [1, 1]} : vector<2x128xf32> to vector<2x32xf32>
    %172 = vector.extract_strided_slice %167 {offsets = [0, 96], sizes = [2, 32], strides = [1, 1]} : vector<2x128xf32> to vector<2x32xf32>
    %173 = arith.mulf %170, %137 : vector<2x32xf32>
    %174 = arith.mulf %169, %171 : vector<2x32xf32>
    %175 = arith.addf %173, %174 : vector<2x32xf32>
    %176 = math.tanh %175 : vector<2x32xf32>
    %177 = arith.mulf %172, %176 : vector<2x32xf32>
    %178 = tpu.concatenate %177, %157 in 1 : vector<2x32xf32>, vector<2x32xf32> -> vector<2x64xf32>
    %cst_33 = arith.constant dense<0.000000e+00> : vector<2x128xf32>
    %179 = tpu.matmul %178, %1, %cst_33 {dimension_numbers = #tpu.dot_dimension_numbers<[1], [0], [0], [1], [0, 0, 1, 1], [], []>} : vector<2x64xf32>, vector<64x128xf32>, vector<2x128xf32> -> vector<2x128xf32>
    %180 = arith.addf %179, %4 : vector<2x128xf32>
    %181 = arith.negf %180 : vector<2x128xf32>
    %182 = math.exp %181 : vector<2x128xf32>
    %cst_34 = arith.constant 1.000000e+00 : f32
    %183 = vector.broadcast %cst_34 : f32 to vector<2x128xf32>
    %184 = arith.addf %183, %182 : vector<2x128xf32>
    %185 = arith.divf %183, %184 : vector<2x128xf32>
    %186 = math.tanh %180 : vector<2x128xf32>
    %187 = vector.extract_strided_slice %185 {offsets = [0, 0], sizes = [2, 32], strides = [1, 1]} : vector<2x128xf32> to vector<2x32xf32>
    %188 = vector.extract_strided_slice %185 {offsets = [0, 32], sizes = [2, 32], strides = [1, 1]} : vector<2x128xf32> to vector<2x32xf32>
    %189 = vector.extract_strided_slice %186 {offsets = [0, 64], sizes = [2, 32], strides = [1, 1]} : vector<2x128xf32> to vector<2x32xf32>
    %190 = vector.extract_strided_slice %185 {offsets = [0, 96], sizes = [2, 32], strides = [1, 1]} : vector<2x128xf32> to vector<2x32xf32>
    %191 = arith.mulf %188, %155 : vector<2x32xf32>
    %192 = arith.mulf %187, %189 : vector<2x32xf32>
    %193 = arith.addf %191, %192 : vector<2x32xf32>
    %194 = math.tanh %193 : vector<2x32xf32>
    %195 = arith.mulf %190, %194 : vector<2x32xf32>
    %c5_i32 = arith.constant 5 : i32
    %196 = arith.index_cast %c5_i32 : i32 to index
    %c0_35 = arith.constant 0 : index
    %c0_36 = arith.constant 0 : index
    %197 = vector.load %arg1[%196, %c0_35, %c0_36] : memref<8x2x128xf32, #tpu.memory_space<vmem>>, vector<1x2x128xf32>
    %198 = vector.shape_cast %197 : vector<1x2x128xf32> to vector<2x128xf32>
    %cst_37 = arith.constant dense<0.000000e+00> : vector<2x128xf32>
    %199 = tpu.matmul %177, %0, %cst_37 {dimension_numbers = #tpu.dot_dimension_numbers<[1], [0], [0], [1], [0, 0, 1, 1], [], []>} : vector<2x32xf32>, vector<32x128xf32>, vector<2x128xf32> -> vector<2x128xf32>
    %200 = arith.addf %198, %199 : vector<2x128xf32>
    %201 = arith.negf %200 : vector<2x128xf32>
    %202 = math.exp %201 : vector<2x128xf32>
    %cst_38 = arith.constant 1.000000e+00 : f32
    %203 = vector.broadcast %cst_38 : f32 to vector<2x128xf32>
    %204 = arith.addf %203, %202 : vector<2x128xf32>
    %205 = arith.divf %203, %204 : vector<2x128xf32>
    %206 = math.tanh %200 : vector<2x128xf32>
    %207 = vector.extract_strided_slice %205 {offsets = [0, 0], sizes = [2, 32], strides = [1, 1]} : vector<2x128xf32> to vector<2x32xf32>
    %208 = vector.extract_strided_slice %205 {offsets = [0, 32], sizes = [2, 32], strides = [1, 1]} : vector<2x128xf32> to vector<2x32xf32>
    %209 = vector.extract_strided_slice %206 {offsets = [0, 64], sizes = [2, 32], strides = [1, 1]} : vector<2x128xf32> to vector<2x32xf32>
    %210 = vector.extract_strided_slice %205 {offsets = [0, 96], sizes = [2, 32], strides = [1, 1]} : vector<2x128xf32> to vector<2x32xf32>
    %211 = arith.mulf %208, %175 : vector<2x32xf32>
    %212 = arith.mulf %207, %209 : vector<2x32xf32>
    %213 = arith.addf %211, %212 : vector<2x32xf32>
    %214 = math.tanh %213 : vector<2x32xf32>
    %215 = arith.mulf %210, %214 : vector<2x32xf32>
    %216 = tpu.concatenate %215, %195 in 1 : vector<2x32xf32>, vector<2x32xf32> -> vector<2x64xf32>
    %cst_39 = arith.constant dense<0.000000e+00> : vector<2x128xf32>
    %217 = tpu.matmul %216, %1, %cst_39 {dimension_numbers = #tpu.dot_dimension_numbers<[1], [0], [0], [1], [0, 0, 1, 1], [], []>} : vector<2x64xf32>, vector<64x128xf32>, vector<2x128xf32> -> vector<2x128xf32>
    %218 = arith.addf %217, %4 : vector<2x128xf32>
    %219 = arith.negf %218 : vector<2x128xf32>
    %220 = math.exp %219 : vector<2x128xf32>
    %cst_40 = arith.constant 1.000000e+00 : f32
    %221 = vector.broadcast %cst_40 : f32 to vector<2x128xf32>
    %222 = arith.addf %221, %220 : vector<2x128xf32>
    %223 = arith.divf %221, %222 : vector<2x128xf32>
    %224 = math.tanh %218 : vector<2x128xf32>
    %225 = vector.extract_strided_slice %223 {offsets = [0, 0], sizes = [2, 32], strides = [1, 1]} : vector<2x128xf32> to vector<2x32xf32>
    %226 = vector.extract_strided_slice %223 {offsets = [0, 32], sizes = [2, 32], strides = [1, 1]} : vector<2x128xf32> to vector<2x32xf32>
    %227 = vector.extract_strided_slice %224 {offsets = [0, 64], sizes = [2, 32], strides = [1, 1]} : vector<2x128xf32> to vector<2x32xf32>
    %228 = vector.extract_strided_slice %223 {offsets = [0, 96], sizes = [2, 32], strides = [1, 1]} : vector<2x128xf32> to vector<2x32xf32>
    %229 = arith.mulf %226, %193 : vector<2x32xf32>
    %230 = arith.mulf %225, %227 : vector<2x32xf32>
    %231 = arith.addf %229, %230 : vector<2x32xf32>
    %232 = math.tanh %231 : vector<2x32xf32>
    %233 = arith.mulf %228, %232 : vector<2x32xf32>
    %c6_i32 = arith.constant 6 : i32
    %234 = arith.index_cast %c6_i32 : i32 to index
    %c0_41 = arith.constant 0 : index
    %c0_42 = arith.constant 0 : index
    %235 = vector.load %arg1[%234, %c0_41, %c0_42] : memref<8x2x128xf32, #tpu.memory_space<vmem>>, vector<1x2x128xf32>
    %236 = vector.shape_cast %235 : vector<1x2x128xf32> to vector<2x128xf32>
    %cst_43 = arith.constant dense<0.000000e+00> : vector<2x128xf32>
    %237 = tpu.matmul %215, %0, %cst_43 {dimension_numbers = #tpu.dot_dimension_numbers<[1], [0], [0], [1], [0, 0, 1, 1], [], []>} : vector<2x32xf32>, vector<32x128xf32>, vector<2x128xf32> -> vector<2x128xf32>
    %238 = arith.addf %236, %237 : vector<2x128xf32>
    %239 = arith.negf %238 : vector<2x128xf32>
    %240 = math.exp %239 : vector<2x128xf32>
    %cst_44 = arith.constant 1.000000e+00 : f32
    %241 = vector.broadcast %cst_44 : f32 to vector<2x128xf32>
    %242 = arith.addf %241, %240 : vector<2x128xf32>
    %243 = arith.divf %241, %242 : vector<2x128xf32>
    %244 = math.tanh %238 : vector<2x128xf32>
    %245 = vector.extract_strided_slice %243 {offsets = [0, 0], sizes = [2, 32], strides = [1, 1]} : vector<2x128xf32> to vector<2x32xf32>
    %246 = vector.extract_strided_slice %243 {offsets = [0, 32], sizes = [2, 32], strides = [1, 1]} : vector<2x128xf32> to vector<2x32xf32>
    %247 = vector.extract_strided_slice %244 {offsets = [0, 64], sizes = [2, 32], strides = [1, 1]} : vector<2x128xf32> to vector<2x32xf32>
    %248 = vector.extract_strided_slice %243 {offsets = [0, 96], sizes = [2, 32], strides = [1, 1]} : vector<2x128xf32> to vector<2x32xf32>
    %249 = arith.mulf %246, %213 : vector<2x32xf32>
    %250 = arith.mulf %245, %247 : vector<2x32xf32>
    %251 = arith.addf %249, %250 : vector<2x32xf32>
    %252 = math.tanh %251 : vector<2x32xf32>
    %253 = arith.mulf %248, %252 : vector<2x32xf32>
    %254 = tpu.concatenate %253, %233 in 1 : vector<2x32xf32>, vector<2x32xf32> -> vector<2x64xf32>
    %cst_45 = arith.constant dense<0.000000e+00> : vector<2x128xf32>
    %255 = tpu.matmul %254, %1, %cst_45 {dimension_numbers = #tpu.dot_dimension_numbers<[1], [0], [0], [1], [0, 0, 1, 1], [], []>} : vector<2x64xf32>, vector<64x128xf32>, vector<2x128xf32> -> vector<2x128xf32>
    %256 = arith.addf %255, %4 : vector<2x128xf32>
    %257 = arith.negf %256 : vector<2x128xf32>
    %258 = math.exp %257 : vector<2x128xf32>
    %cst_46 = arith.constant 1.000000e+00 : f32
    %259 = vector.broadcast %cst_46 : f32 to vector<2x128xf32>
    %260 = arith.addf %259, %258 : vector<2x128xf32>
    %261 = arith.divf %259, %260 : vector<2x128xf32>
    %262 = math.tanh %256 : vector<2x128xf32>
    %263 = vector.extract_strided_slice %261 {offsets = [0, 0], sizes = [2, 32], strides = [1, 1]} : vector<2x128xf32> to vector<2x32xf32>
    %264 = vector.extract_strided_slice %261 {offsets = [0, 32], sizes = [2, 32], strides = [1, 1]} : vector<2x128xf32> to vector<2x32xf32>
    %265 = vector.extract_strided_slice %262 {offsets = [0, 64], sizes = [2, 32], strides = [1, 1]} : vector<2x128xf32> to vector<2x32xf32>
    %266 = vector.extract_strided_slice %261 {offsets = [0, 96], sizes = [2, 32], strides = [1, 1]} : vector<2x128xf32> to vector<2x32xf32>
    %267 = arith.mulf %264, %231 : vector<2x32xf32>
    %268 = arith.mulf %263, %265 : vector<2x32xf32>
    %269 = arith.addf %267, %268 : vector<2x32xf32>
    %270 = math.tanh %269 : vector<2x32xf32>
    %271 = arith.mulf %266, %270 : vector<2x32xf32>
    %c7_i32 = arith.constant 7 : i32
    %272 = arith.index_cast %c7_i32 : i32 to index
    %c0_47 = arith.constant 0 : index
    %c0_48 = arith.constant 0 : index
    %273 = vector.load %arg1[%272, %c0_47, %c0_48] : memref<8x2x128xf32, #tpu.memory_space<vmem>>, vector<1x2x128xf32>
    %274 = vector.shape_cast %273 : vector<1x2x128xf32> to vector<2x128xf32>
    %cst_49 = arith.constant dense<0.000000e+00> : vector<2x128xf32>
    %275 = tpu.matmul %253, %0, %cst_49 {dimension_numbers = #tpu.dot_dimension_numbers<[1], [0], [0], [1], [0, 0, 1, 1], [], []>} : vector<2x32xf32>, vector<32x128xf32>, vector<2x128xf32> -> vector<2x128xf32>
    %276 = arith.addf %274, %275 : vector<2x128xf32>
    %277 = arith.negf %276 : vector<2x128xf32>
    %278 = math.exp %277 : vector<2x128xf32>
    %cst_50 = arith.constant 1.000000e+00 : f32
    %279 = vector.broadcast %cst_50 : f32 to vector<2x128xf32>
    %280 = arith.addf %279, %278 : vector<2x128xf32>
    %281 = arith.divf %279, %280 : vector<2x128xf32>
    %282 = math.tanh %276 : vector<2x128xf32>
    %283 = vector.extract_strided_slice %281 {offsets = [0, 0], sizes = [2, 32], strides = [1, 1]} : vector<2x128xf32> to vector<2x32xf32>
    %284 = vector.extract_strided_slice %281 {offsets = [0, 32], sizes = [2, 32], strides = [1, 1]} : vector<2x128xf32> to vector<2x32xf32>
    %285 = vector.extract_strided_slice %282 {offsets = [0, 64], sizes = [2, 32], strides = [1, 1]} : vector<2x128xf32> to vector<2x32xf32>
    %286 = vector.extract_strided_slice %281 {offsets = [0, 96], sizes = [2, 32], strides = [1, 1]} : vector<2x128xf32> to vector<2x32xf32>
    %287 = arith.mulf %284, %251 : vector<2x32xf32>
    %288 = arith.mulf %283, %285 : vector<2x32xf32>
    %289 = arith.addf %287, %288 : vector<2x32xf32>
    %290 = math.tanh %289 : vector<2x32xf32>
    %291 = arith.mulf %286, %290 : vector<2x32xf32>
    %292 = tpu.concatenate %291, %271 in 1 : vector<2x32xf32>, vector<2x32xf32> -> vector<2x64xf32>
    %cst_51 = arith.constant dense<0.000000e+00> : vector<2x128xf32>
    %293 = tpu.matmul %292, %1, %cst_51 {dimension_numbers = #tpu.dot_dimension_numbers<[1], [0], [0], [1], [0, 0, 1, 1], [], []>} : vector<2x64xf32>, vector<64x128xf32>, vector<2x128xf32> -> vector<2x128xf32>
    %294 = arith.addf %293, %4 : vector<2x128xf32>
    %295 = arith.negf %294 : vector<2x128xf32>
    %296 = math.exp %295 : vector<2x128xf32>
    %cst_52 = arith.constant 1.000000e+00 : f32
    %297 = vector.broadcast %cst_52 : f32 to vector<2x128xf32>
    %298 = arith.addf %297, %296 : vector<2x128xf32>
    %299 = arith.divf %297, %298 : vector<2x128xf32>
    %300 = math.tanh %294 : vector<2x128xf32>
    %301 = vector.extract_strided_slice %299 {offsets = [0, 0], sizes = [2, 32], strides = [1, 1]} : vector<2x128xf32> to vector<2x32xf32>
    %302 = vector.extract_strided_slice %299 {offsets = [0, 32], sizes = [2, 32], strides = [1, 1]} : vector<2x128xf32> to vector<2x32xf32>
    %303 = vector.extract_strided_slice %300 {offsets = [0, 64], sizes = [2, 32], strides = [1, 1]} : vector<2x128xf32> to vector<2x32xf32>
    %304 = vector.extract_strided_slice %299 {offsets = [0, 96], sizes = [2, 32], strides = [1, 1]} : vector<2x128xf32> to vector<2x32xf32>
    %305 = arith.mulf %302, %269 : vector<2x32xf32>
    %306 = arith.mulf %301, %303 : vector<2x32xf32>
    %307 = arith.addf %305, %306 : vector<2x32xf32>
    %308 = math.tanh %307 : vector<2x32xf32>
    %309 = arith.mulf %304, %308 : vector<2x32xf32>
    %c8_i32 = arith.constant 8 : i32
    %c0_53 = arith.constant 0 : index
    %c0_54 = arith.constant 0 : index
    %c0_55 = arith.constant 0 : index
    %310 = vector.load %arg8[%c0_53, %c0_54, %c0_55] : memref<2x2x32xf32, #tpu.memory_space<vmem>>, vector<1x2x32xf32>
    %311 = vector.shape_cast %310 : vector<1x2x32xf32> to vector<2x32xf32>
    %312 = vector.shape_cast %291 : vector<2x32xf32> to vector<1x2x32xf32>
    tpu.vector_store %arg8[%c0_53, %c0_54, %c0_55], %312 {strides = array<i32>} : memref<2x2x32xf32, #tpu.memory_space<vmem>>, vector<1x2x32xf32>,
    %c1 = arith.constant 1 : index
    %c0_56 = arith.constant 0 : index
    %c0_57 = arith.constant 0 : index
    %313 = vector.load %arg8[%c1, %c0_56, %c0_57] : memref<2x2x32xf32, #tpu.memory_space<vmem>>, vector<1x2x32xf32>
    %314 = vector.shape_cast %313 : vector<1x2x32xf32> to vector<2x32xf32>
    %315 = vector.shape_cast %309 : vector<2x32xf32> to vector<1x2x32xf32>
    tpu.vector_store %arg8[%c1, %c0_56, %c0_57], %315 {strides = array<i32>} : memref<2x2x32xf32, #tpu.memory_space<vmem>>, vector<1x2x32xf32>,
    %c0_58 = arith.constant 0 : index
    %c0_59 = arith.constant 0 : index
    %c0_60 = arith.constant 0 : index
    %316 = vector.load %arg9[%c0_58, %c0_59, %c0_60] : memref<2x2x32xf32, #tpu.memory_space<vmem>>, vector<1x2x32xf32>
    %317 = vector.shape_cast %316 : vector<1x2x32xf32> to vector<2x32xf32>
    %318 = vector.shape_cast %289 : vector<2x32xf32> to vector<1x2x32xf32>
    tpu.vector_store %arg9[%c0_58, %c0_59, %c0_60], %318 {strides = array<i32>} : memref<2x2x32xf32, #tpu.memory_space<vmem>>, vector<1x2x32xf32>,
    %c1_61 = arith.constant 1 : index
    %c0_62 = arith.constant 0 : index
    %c0_63 = arith.constant 0 : index
    %319 = vector.load %arg9[%c1_61, %c0_62, %c0_63] : memref<2x2x32xf32, #tpu.memory_space<vmem>>, vector<1x2x32xf32>
    %320 = vector.shape_cast %319 : vector<1x2x32xf32> to vector<2x32xf32>
    %321 = vector.shape_cast %307 : vector<2x32xf32> to vector<1x2x32xf32>
    tpu.vector_store %arg9[%c1_61, %c0_62, %c0_63], %321 {strides = array<i32>} : memref<2x2x32xf32, #tpu.memory_space<vmem>>, vector<1x2x32xf32>,
    %c0_64 = arith.constant 0 : index
    %c0_65 = arith.constant 0 : index
    %322 = vector.load %arg5[%c0_64, %c0_65] : memref<32x64xf32, #tpu.memory_space<vmem>>, vector<32x64xf32>
    %cst_66 = arith.constant dense<0.000000e+00> : vector<2x64xf32>
    %323 = tpu.matmul %309, %322, %cst_66 {dimension_numbers = #tpu.dot_dimension_numbers<[1], [0], [0], [1], [0, 0, 1, 1], [], []>} : vector<2x32xf32>, vector<32x64xf32>, vector<2x64xf32> -> vector<2x64xf32>
    %c0_67 = arith.constant 0 : index
    %c0_68 = arith.constant 0 : index
    %324 = vector.load %arg6[%c0_67, %c0_68] : memref<1x64xf32, #tpu.memory_space<vmem>>, vector<1x64xf32>
    %325 = vector.broadcast %324 : vector<1x64xf32> to vector<2x64xf32>
    %326 = arith.addf %323, %325 : vector<2x64xf32>
    %c0_69 = arith.constant 0 : index
    %c0_70 = arith.constant 0 : index
    %327 = vector.load %arg7[%c0_69, %c0_70] : memref<2x64xf32, #tpu.memory_space<vmem>>, vector<2x64xf32>
    tpu.vector_store %arg7[%c0_69, %c0_70], %326 {strides = array<i32>} : memref<2x64xf32, #tpu.memory_space<vmem>>, vector<2x64xf32>,
    return
  }
  func.func @transform_0(%arg0: i32) -> (i32, i32, i32) {
    %c0_i32 = arith.constant 0 : i32
    %c0_i32_0 = arith.constant 0 : i32
    %c0_i32_1 = arith.constant 0 : i32
    return %c0_i32, %arg0, %c0_i32_0 : i32, i32, i32
  }
  func.func @transform_1(%arg0: i32) -> (i32, i32) {
    %c0_i32 = arith.constant 0 : i32
    %c0_i32_0 = arith.constant 0 : i32
    %c0_i32_1 = arith.constant 0 : i32
    return %c0_i32, %c0_i32_0 : i32, i32
  }
  func.func @transform_2(%arg0: i32) -> (i32, i32) {
    %c0_i32 = arith.constant 0 : i32
    %c0_i32_0 = arith.constant 0 : i32
    %c0_i32_1 = arith.constant 0 : i32
    return %c0_i32, %c0_i32_0 : i32, i32
  }
  func.func @transform_3(%arg0: i32) -> (i32, i32) {
    %c0_i32 = arith.constant 0 : i32
    %c0_i32_0 = arith.constant 0 : i32
    %c0_i32_1 = arith.constant 0 : i32
    return %c0_i32, %c0_i32_0 : i32, i32
  }
  func.func @transform_4(%arg0: i32) -> (i32, i32) {
    %c0_i32 = arith.constant 0 : i32
    %c0_i32_0 = arith.constant 0 : i32
    %c0_i32_1 = arith.constant 0 : i32
    return %c0_i32, %c0_i32_0 : i32, i32
  }
  func.func @transform_5(%arg0: i32) -> (i32, i32) {
    %c0_i32 = arith.constant 0 : i32
    %c0_i32_0 = arith.constant 0 : i32
    %c0_i32_1 = arith.constant 0 : i32
    return %c0_i32, %c0_i32_0 : i32, i32
  }
  func.func @transform_6(%arg0: i32) -> (i32, i32) {
    %c0_i32 = arith.constant 0 : i32
    %c0_i32_0 = arith.constant 0 : i32
    return %arg0, %c0_i32 : i32, i32
  }
  func.func @transform_7(%arg0: i32) -> (i32, i32, i32) {
    %c0_i32 = arith.constant 0 : i32
    %c0_i32_0 = arith.constant 0 : i32
    %c0_i32_1 = arith.constant 0 : i32
    return %c0_i32, %arg0, %c0_i32_0 : i32, i32, i32
  }
  func.func @transform_8(%arg0: i32) -> (i32, i32, i32) {
    %c0_i32 = arith.constant 0 : i32
    %c0_i32_0 = arith.constant 0 : i32
    %c0_i32_1 = arith.constant 0 : i32
    return %c0_i32, %arg0, %c0_i32_0 : i32, i32, i32
  }
}

</mosaic_0001>

<bundles_post_ra>
// kernel: music_lstm_forward.1
= control target key start
LH: loop header
LB: loop body
LE: loop exit
PB: predicated region body
PF: predicated region fallthrough
CT: control target
= control target key end

     0   :  { %14 = vsyncpa [#allocation3], 0  ;;  %v2601_v3 = vmov 0.0|0.0   ;;  %vm2602_vm0 = vmmov 0   ;;  %v2603_v6 = vmov 0.0   ;;  %s3065_s0 = inlined_call_operand.vmem [shape: f32[8,2,128], index: 0, kind: input, shape index: {}]   ;;  %s3066_s1 = inlined_call_operand.vmem [shape: f32[32,128], index: 1, kind: input, shape index: {}]   ;;  %s3067_s2 = inlined_call_operand.vmem [shape: f32[64,128], index: 2, kind: input, shape index: {}]   ;;  %s3068_s3 = inlined_call_operand.vmem [shape: f32[1,128], index: 3, kind: input, shape index: {}]   ;;  %s3069_s4 = inlined_call_operand.vmem [shape: f32[32,64], index: 4, kind: input, shape index: {}]   ;;  %s3070_s5 = inlined_call_operand.vmem [shape: f32[1,64], index: 5, kind: input, shape index: {}]   ;;  %s3071_s6 = inlined_call_operand.hbm [shape: f32[2,64], index: 6, kind: output, shape index: {0}]   ;;  %s3072_s7 = inlined_call_operand.hbm [shape: f32[2,2,32], index: 7, kind: output, shape index: {1}]   ;;  %s3073_s8 = inlined_call_operand.hbm [shape: f32[2,2,32], index: 8, kind: output, shape index: {2}]  }
   0x1   :  { %v28_v0 = vld [vmem:[%s3066_s1] sm:$0xff]  ;;  %v29_v1 = vld [vmem:[%s3066_s1 + $0x8] sm:$0xff]  ;;  %v30_v2 = vld [vmem:[%s3066_s1 + $0x10] sm:$0xff]  ;;  %2243 = vmatprep.subr.bf16.mxu0 %v2601_v3  ;;  %2000 = vmatprep.mubr.msk.f32.mxu0 %vm2602_vm0, %v2603_v6 }
   0x2   :  { %v2666_v4 = vpack.c.bf16 %v29_v1, %v28_v0  ;;  %v31_v5 = vld [vmem:[%s3066_s1 + $0x18] sm:$0xff] }
   0x3   :  { %15 = vsyncpa [#allocation5], 0  ;;  %2249 = vmatprep.subr.bf16.mxu1 %v2601_v3  ;;  %2019 = vmatprep.mubr.msk.f32.mxu1 %vm2602_vm0, %v2603_v6  ;;  %v2677_v7 = vpack.c.bf16 %v31_v5, %v30_v2  ;;  %v47_v8 = vld [vmem:[%s3065_s0] sm:$0x3]  ;;  %s2604_s14 = smov 64   ;;  %s2605_s15 = smov 32  }
   0x4   :  { %2245 = vmatpush3.bf16.msra.mxu0 %v2666_v4  ;;  %v32_v22 = vld [vmem:[%s3067_s2] sm:$0xff]  ;;  %v33_v23 = vld [vmem:[%s3067_s2 + $0x8] sm:$0xff]  ;;  %v34_v24 = vld [vmem:[%s3067_s2 + $0x10] sm:$0xff]  ;;  %vm48_vm1 = vcmask 261120   ;;  %vm152_vm2 = vcmask 523264   ;;  %vm1685_vm3 = vcmask 254976  }
   0x5   :  { %2246 = vmatprep.subr.bf16.mxu0 %v2601_v3  ;;  %v2706_v25 = vpack.c.bf16 %v33_v23, %v32_v22  ;;  %v35_v26 = vld [vmem:[%s3067_s2 + $0x18] sm:$0xff]  ;;  %v36_v28 = vld [vmem:[%s3067_s2 + $0x20] sm:$0xff]  ;;  %v37_v29 = vld [vmem:[%s3067_s2 + $0x28] sm:$0xff] }
   0x6   :  { %v2712_v27 = vpack.c.bf16 %v35_v26, %v34_v24  ;;  %v2722_v30 = vpack.c.bf16 %v37_v29, %v36_v28  ;;  %v38_v31 = vld [vmem:[%s3067_s2 + $0x30] sm:$0xff]  ;;  %v39_v32 = vld [vmem:[%s3067_s2 + $0x38] sm:$0xff]  ;;  %v1838_v39 = vld [vmem:[%s3065_s0 + $0x2] sm:$0x3]  ;;  %s2606_s2 = smov 96  }
   0x7   :  { %2251 = vmatpush3.bf16.msra.mxu1 %v2706_v25  ;;  %v2733_v34 = vpack.c.bf16 %v39_v32, %v38_v31  ;;  %v2764_v40 = vld [vmem:[%s3068_s3] ss:$0 sm:$0xff] }
   0x8   :  { %2248 = vmatpush3.bf16.msra.mxu0 %v2677_v7  ;;  %2252 = vmatprep.subr.bf16.mxu1 %v2601_v3 }
   0x9   :  { %2261 = vmatprep.subr.bf16.mxu0 %v2601_v3 }
   0xb   :  { %2001 = vmatmul.mubr.f32.vlgmr.msra.gmra.mrb[0].mxu0 %v2603_v6  ;;  %2254 = vmatpush3.bf16.msra.mxu1 %v2712_v27 }
   0xc   :  { %2263 = vmatpush3.bf16.msra.mxu0 %v2666_v4  ;;  %2030 = vmatprep.mubr.msk.f32.mxu0 %vm2602_vm0, %v2603_v6 }
   0xd   :  { %2264 = vmatprep.subr.bf16.mxu0 %v2601_v3  ;;  %2255 = vmatprep.subr.bf16.mxu1 %v2601_v3 }
   0xf   :  { %2257 = vmatpush3.bf16.msra.mxu1 %v2722_v30 }
  0x10   :  { %2266 = vmatpush3.bf16.msra.mxu0 %v2677_v7  ;;  %2258 = vmatprep.subr.bf16.mxu1 %v2601_v3 }
  0x11   :  { %2267 = vmatprep.subr.bf16.mxu0 %v2601_v3 }
  0x13   :  { %2260 = vmatpush3.bf16.msra.mxu1 %v2733_v34 }
  0x14   :  { %2279 = vmatprep.subr.bf16.mxu1 %v2601_v3 }
  0xde   :  { %v118_v9 = vpop.f32.mrb[0].mxu0 }
  0xdf   :  { %v122_v10 = vadd.f32 %v118_v9, %v47_v8  ;;  %v2002_v11 = vpop.f32.mrb[1].mxu0 }
  0xe1   :  { %2403 = vtanh.f32 %v122_v10  ;;  %v1835_v13 = vmul.f32 -1.442695, %v122_v10 }
  0xe3   :  { %2405 = vpow2.f32 %v1835_v13 }
  0xeb   :  { %v2404_v12 = vpop.eup %2403 }
  0xec   :  { %132 = vrot.lane.b32.xlu0 %v2404_v12, %s2604_s14 }
  0xed   :  { %v2406_v14 = vpop.eup %2405 }
  0xee   :  { %v126_v15 = vadd.f32 1.0, %v2406_v14 }
  0xf0   :  { %2407 = vrcp.f32 %v126_v15 }
  0xfa   :  { %v2408_v16 = vpop.eup %2407 }
  0xfb   :  { %v130_v19 = vmul.f32 0.0, %v2408_v16 }
 0x15e   :  { %v133_v17 = vpop.permute.xlu0 %132 }
 0x15f   :  { %v135_v18 = vmul.f32 %v2408_v16, %v133_v17 }
 0x161   :  { %137 = vrot.lane.b32.xlu0 %v135_v18, %s2605_s15 }
 0x1d3   :  { %v138_v20 = vpop.permute.xlu0 %137 }
 0x1d4   :  { %v2694_v21 = vadd.f32 %v138_v20, %v130_v19 }
 0x1d6   :  { %2409 = vtanh.f32 %v2694_v21 }
 0x1e0   :  { %v2410_v33 = vpop.eup %2409 }
 0x1e1   :  { %143 = vrot.lane.b32.xlu1 %v2410_v33, %s2604_s14 }
 0x253   :  { %v144_v35 = vpop.permute.xlu1 %143 }
 0x254   :  { %v146_v36 = vmul.f32 %v2408_v16, %v144_v35  ;;  %v1843_v16 = vld [vmem:[%s3065_s0 + $0x4] sm:$0x3] }
 0x256   :  { %148 = vrot.lane.b32.xlu1 %v146_v36, %s2605_s15 }
 0x2c8   :  { %v149_v37 = vpop.permute.xlu1 %148 }
 0x2c9   :  { %v151_v38 = vsel %vm48_vm1, %v149_v37, 0.0  ;;  %2031 = vmatmul.mubr.msk.f32.vlgmr.msra.gmra.mrb[2].mxu0 %vm48_vm1, %v149_v37 }
 0x2ca   :  { %2020 = vmatmul.mubr.msk.f32.vlgmr.msra.gmra.mrb[0].mxu1 %vm152_vm2, %v151_v38  ;;  %2269 = vmatpush3.bf16.msra.mxu0 %v2706_v25 }
 0x2cb   :  { %2270 = vmatprep.subr.bf16.mxu0 %v2601_v3  ;;  %2281 = vmatpush3.bf16.msra.mxu1 %v2666_v4 }
 0x2cc   :  { %2282 = vmatprep.subr.bf16.mxu1 %v2601_v3  ;;  %2060 = vmatprep.mubr.msk.f32.mxu1 %vm2602_vm0, %v2603_v6 }
 0x2cd   :  { %2049 = vmatprep.mubr.msk.f32.mxu0 %vm2602_vm0, %v2603_v6 }
 0x2ce   :  { %2272 = vmatpush3.bf16.msra.mxu0 %v2712_v27 }
 0x2cf   :  { %2273 = vmatprep.subr.bf16.mxu0 %v2601_v3  ;;  %2284 = vmatpush3.bf16.msra.mxu1 %v2677_v7 }
 0x2d0   :  { %2285 = vmatprep.subr.bf16.mxu1 %v2601_v3 }
 0x2d2   :  { %2275 = vmatpush3.bf16.msra.mxu0 %v2722_v30 }
 0x2d3   :  { %2276 = vmatprep.subr.bf16.mxu0 %v2601_v3 }
 0x2d6   :  { %2278 = vmatpush3.bf16.msra.mxu0 %v2733_v34 }
 0x2d7   :  { %2297 = vmatprep.subr.bf16.mxu0 %v2601_v3 }
 0x39c   :  { %v320_v41 = vpop.f32.mrb[2].mxu0 }
 0x39d   :  { %v324_v42 = vadd.f32 %v1838_v39, %v320_v41  ;;  %v222_v43 = vpop.f32.mrb[0].mxu1  ;;  %v2032_v44 = vpop.f32.mrb[3].mxu0 }
 0x39e   :  { %v223_v45 = vadd.f32 %v2764_v40, %v222_v43  ;;  %v2021_v46 = vpop.f32.mrb[1].mxu1 }
 0x39f   :  { %2411 = vtanh.f32 %v324_v42  ;;  %v1840_v49 = vmul.f32 -1.442695, %v324_v42 }
 0x3a0   :  { %2413 = vtanh.f32 %v223_v45  ;;  %v1837_v50 = vmul.f32 -1.442695, %v223_v45 }
 0x3a1   :  { %2415 = vpow2.f32 %v1840_v49 }
 0x3a2   :  { %2417 = vpow2.f32 %v1837_v50 }
 0x3a9   :  { %v2412_v47 = vpop.eup %2411 }
 0x3aa   :  { %v2414_v48 = vpop.eup %2413  ;;  %334 = vrot.lane.b32.xlu1 %v2412_v47, %s2604_s14 }
 0x3ab   :  { %235 = vrot.lane.b32.xlu0 %v2414_v48, %s2604_s14  ;;  %v2416_v51 = vpop.eup %2415 }
 0x3ac   :  { %v2418_v52 = vpop.eup %2417  ;;  %v328_v53 = vadd.f32 1.0, %v2416_v51 }
 0x3ad   :  { %v229_v54 = vadd.f32 1.0, %v2418_v52 }
 0x3ae   :  { %2419 = vrcp.f32 %v328_v53 }
 0x3af   :  { %2421 = vrcp.f32 %v229_v54 }
 0x3b8   :  { %v2420_v55 = vpop.eup %2419 }
 0x3b9   :  { %v2422_v57 = vpop.eup %2421  ;;  %v332_v61 = vmul.f32 %v2420_v55, %v2694_v21 }
 0x3ba   :  { %v233_v63 = vmul.f32 0.0, %v2422_v57 }
 0x41c   :  { %v335_v56 = vpop.permute.xlu1 %334 }
 0x41d   :  { %v337_v58 = vmul.f32 %v2420_v55, %v335_v56  ;;  %v236_v59 = vpop.permute.xlu0 %235 }
 0x41e   :  { %v238_v60 = vmul.f32 %v2422_v57, %v236_v59 }
 0x41f   :  { %339 = vrot.lane.b32.xlu1 %v337_v58, %s2605_s15 }
 0x420   :  { %240 = vrot.lane.b32.xlu0 %v238_v60, %s2605_s15 }
 0x491   :  { %v340_v62 = vpop.permute.xlu1 %339 }
 0x492   :  { %v2772_v0 = vadd.f32 %v340_v62, %v332_v61  ;;  %v241_v1 = vpop.permute.xlu0 %240 }
 0x493   :  { %v2774_v2 = vadd.f32 %v241_v1, %v233_v63 }
 0x494   :  { %2423 = vtanh.f32 %v2772_v0 }
 0x495   :  { %2425 = vtanh.f32 %v2774_v2 }
 0x49e   :  { %v2424_v5 = vpop.eup %2423 }
 0x49f   :  { %v2426_v8 = vpop.eup %2425  ;;  %345 = vrot.lane.b32.xlu1 %v2424_v5, %s2604_s14 }
 0x4a0   :  { %246 = vrot.lane.b32.xlu0 %v2426_v8, %s2604_s14 }
 0x511   :  { %v346_v9 = vpop.permute.xlu1 %345 }
 0x512   :  { %v348_v10 = vmul.f32 %v2420_v55, %v346_v9  ;;  %v247_v11 = vpop.permute.xlu0 %246 }
 0x513   :  { %v249_v12 = vmul.f32 %v2422_v57, %v247_v11  ;;  %v1848_v57 = vld [vmem:[%s3065_s0 + $0x6] sm:$0x3] }
 0x514   :  { %350 = vrot.lane.b32.xlu0 %v348_v10, %s2605_s15 }
 0x515   :  { %354 = vrot.lane.b32.xlu1 %v249_v12, %s2604_s14 }
 0x586   :  { %v351_v13 = vpop.permute.xlu0 %350 }
 0x587   :  { %2061 = vmatmul.mubr.msk.f32.vlgmr.msra.gmra.mrb[2].mxu1 %vm48_vm1, %v351_v13  ;;  %v355_v14 = vpop.permute.xlu1 %354 }
 0x588   :  { %v357_v15 = vsel %vm48_vm1, %v351_v13, %v355_v14  ;;  %2287 = vmatpush3.bf16.msra.mxu1 %v2706_v25  ;;  %2079 = vmatprep.mubr.msk.f32.mxu1 %vm2602_vm0, %v2603_v6 }
 0x589   :  { %2050 = vmatmul.mubr.msk.f32.vlgmr.msra.gmra.mrb[4].mxu0 %vm152_vm2, %v357_v15  ;;  %2288 = vmatprep.subr.bf16.mxu1 %v2601_v3 }
 0x58a   :  { %2299 = vmatpush3.bf16.msra.mxu0 %v2666_v4  ;;  %2090 = vmatprep.mubr.msk.f32.mxu0 %vm2602_vm0, %v2603_v6 }
 0x58b   :  { %2300 = vmatprep.subr.bf16.mxu0 %v2601_v3 }
 0x58c   :  { %2290 = vmatpush3.bf16.msra.mxu1 %v2712_v27 }
 0x58d   :  { %2291 = vmatprep.subr.bf16.mxu1 %v2601_v3 }
 0x58e   :  { %2302 = vmatpush3.bf16.msra.mxu0 %v2677_v7 }
 0x58f   :  { %2303 = vmatprep.subr.bf16.mxu0 %v2601_v3 }
 0x590   :  { %2293 = vmatpush3.bf16.msra.mxu1 %v2722_v30 }
 0x591   :  { %2294 = vmatprep.subr.bf16.mxu1 %v2601_v3 }
 0x594   :  { %2296 = vmatpush3.bf16.msra.mxu1 %v2733_v34 }
 0x595   :  { %2315 = vmatprep.subr.bf16.mxu1 %v2601_v3 }
 0x65a   :  { %v525_v17 = vpop.f32.mrb[2].mxu1 }
 0x65b   :  { %v529_v18 = vadd.f32 %v1843_v16, %v525_v17  ;;  %v2062_v19 = vpop.f32.mrb[3].mxu1 }
 0x65c   :  { %v427_v20 = vpop.f32.mrb[4].mxu0 }
 0x65d   :  { %2427 = vtanh.f32 %v529_v18  ;;  %v428_v21 = vadd.f32 %v2764_v40, %v427_v20  ;;  %v2051_v22 = vpop.f32.mrb[5].mxu0  ;;  %v1845_v26 = vmul.f32 -1.442695, %v529_v18 }
 0x65f   :  { %2429 = vtanh.f32 %v428_v21  ;;  %v1842_v28 = vmul.f32 -1.442695, %v428_v21 }
 0x660   :  { %2431 = vpow2.f32 %v1845_v26 }
 0x661   :  { %2433 = vpow2.f32 %v1842_v28 }
 0x667   :  { %v2428_v23 = vpop.eup %2427 }
 0x668   :  { %539 = vrot.lane.b32.xlu1 %v2428_v23, %s2604_s14 }
 0x669   :  { %v2430_v24 = vpop.eup %2429 }
 0x66a   :  { %440 = vrot.lane.b32.xlu0 %v2430_v24, %s2604_s14  ;;  %v2432_v29 = vpop.eup %2431 }
 0x66b   :  { %v2434_v31 = vpop.eup %2433  ;;  %v533_v32 = vadd.f32 1.0, %v2432_v29 }
 0x66c   :  { %v434_v33 = vadd.f32 1.0, %v2434_v31 }
 0x66d   :  { %2435 = vrcp.f32 %v533_v32 }
 0x66e   :  { %2437 = vrcp.f32 %v434_v33 }
 0x677   :  { %v2436_v35 = vpop.eup %2435 }
 0x678   :  { %v2438_v38 = vpop.eup %2437  ;;  %v537_v42 = vmul.f32 %v2436_v35, %v2772_v0 }
 0x679   :  { %v438_v45 = vmul.f32 %v2438_v38, %v2774_v2 }
 0x6da   :  { %v540_v36 = vpop.permute.xlu1 %539 }
 0x6db   :  { %v542_v37 = vmul.f32 %v2436_v35, %v540_v36 }
 0x6dc   :  { %v441_v39 = vpop.permute.xlu0 %440 }
 0x6dd   :  { %544 = vrot.lane.b32.xlu1 %v542_v37, %s2605_s15  ;;  %v443_v41 = vmul.f32 %v2438_v38, %v441_v39  ;;  %v1853_v37 = vld [vmem:[%s3065_s0 + $0x8] sm:$0x3] }
 0x6df   :  { %445 = vrot.lane.b32.xlu0 %v443_v41, %s2605_s15 }
 0x74f   :  { %v545_v43 = vpop.permute.xlu1 %544 }
 0x750   :  { %v2810_v44 = vadd.f32 %v545_v43, %v537_v42 }
 0x751   :  { %v446_v46 = vpop.permute.xlu0 %445 }
 0x752   :  { %2439 = vtanh.f32 %v2810_v44  ;;  %v2814_v47 = vadd.f32 %v446_v46, %v438_v45 }
 0x754   :  { %2441 = vtanh.f32 %v2814_v47 }
 0x75c   :  { %v2440_v48 = vpop.eup %2439 }
 0x75d   :  { %550 = vrot.lane.b32.xlu1 %v2440_v48, %s2604_s14 }
 0x75e   :  { %v2442_v49 = vpop.eup %2441 }
 0x75f   :  { %451 = vrot.lane.b32.xlu0 %v2442_v49, %s2604_s14 }
 0x7cf   :  { %v551_v50 = vpop.permute.xlu1 %550 }
 0x7d0   :  { %v553_v51 = vmul.f32 %v2436_v35, %v551_v50 }
 0x7d1   :  { %v452_v52 = vpop.permute.xlu0 %451 }
 0x7d2   :  { %555 = vrot.lane.b32.xlu0 %v553_v51, %s2605_s15  ;;  %v454_v53 = vmul.f32 %v2438_v38, %v452_v52 }
 0x7d4   :  { %559 = vrot.lane.b32.xlu1 %v454_v53, %s2604_s14 }
 0x844   :  { %v556_v54 = vpop.permute.xlu0 %555 }
 0x845   :  { %2091 = vmatmul.mubr.msk.f32.vlgmr.msra.gmra.mrb[6].mxu0 %vm48_vm1, %v556_v54 }
 0x846   :  { %2305 = vmatpush3.bf16.msra.mxu0 %v2706_v25  ;;  %2109 = vmatprep.mubr.msk.f32.mxu0 %vm2602_vm0, %v2603_v6  ;;  %v560_v55 = vpop.permute.xlu1 %559 }
 0x847   :  { %2306 = vmatprep.subr.bf16.mxu0 %v2601_v3  ;;  %v562_v56 = vsel %vm48_vm1, %v556_v54, %v560_v55 }
 0x848   :  { %2080 = vmatmul.mubr.msk.f32.vlgmr.msra.gmra.mrb[4].mxu1 %vm152_vm2, %v562_v56 }
 0x849   :  { %2317 = vmatpush3.bf16.msra.mxu1 %v2666_v4  ;;  %2120 = vmatprep.mubr.msk.f32.mxu1 %vm2602_vm0, %v2603_v6 }
 0x84a   :  { %2308 = vmatpush3.bf16.msra.mxu0 %v2712_v27  ;;  %2318 = vmatprep.subr.bf16.mxu1 %v2601_v3 }
 0x84b   :  { %2309 = vmatprep.subr.bf16.mxu0 %v2601_v3 }
 0x84d   :  { %2320 = vmatpush3.bf16.msra.mxu1 %v2677_v7 }
 0x84e   :  { %2311 = vmatpush3.bf16.msra.mxu0 %v2722_v30  ;;  %2321 = vmatprep.subr.bf16.mxu1 %v2601_v3 }
 0x84f   :  { %2312 = vmatprep.subr.bf16.mxu0 %v2601_v3 }
 0x852   :  { %2314 = vmatpush3.bf16.msra.mxu0 %v2733_v34 }
 0x853   :  { %2333 = vmatprep.subr.bf16.mxu0 %v2601_v3 }
 0x918   :  { %v730_v58 = vpop.f32.mrb[6].mxu0 }
 0x919   :  { %v734_v59 = vadd.f32 %v1848_v57, %v730_v58  ;;  %v2092_v60 = vpop.f32.mrb[7].mxu0 }
 0x91b   :  { %2443 = vtanh.f32 %v734_v59  ;;  %v632_v61 = vpop.f32.mrb[4].mxu1  ;;  %v1850_v2 = vmul.f32 -1.442695, %v734_v59 }
 0x91c   :  { %v633_v62 = vadd.f32 %v2764_v40, %v632_v61  ;;  %v2081_v63 = vpop.f32.mrb[5].mxu1 }
 0x91e   :  { %2445 = vtanh.f32 %v633_v62  ;;  %v1847_v5 = vmul.f32 -1.442695, %v633_v62 }
 0x91f   :  { %2447 = vpow2.f32 %v1850_v2 }
 0x920   :  { %2449 = vpow2.f32 %v1847_v5 }
 0x925   :  { %v2444_v0 = vpop.eup %2443 }
 0x926   :  { %744 = vrot.lane.b32.xlu1 %v2444_v0, %s2604_s14 }
 0x928   :  { %v2446_v1 = vpop.eup %2445 }
 0x929   :  { %645 = vrot.lane.b32.xlu0 %v2446_v1, %s2604_s14  ;;  %v2448_v8 = vpop.eup %2447 }
 0x92a   :  { %v738_v9 = vadd.f32 1.0, %v2448_v8  ;;  %v2450_v10 = vpop.eup %2449 }
 0x92b   :  { %v639_v11 = vadd.f32 1.0, %v2450_v10 }
 0x92c   :  { %2451 = vrcp.f32 %v738_v9 }
 0x92d   :  { %2453 = vrcp.f32 %v639_v11 }
 0x936   :  { %v2452_v12 = vpop.eup %2451 }
 0x937   :  { %v2454_v15 = vpop.eup %2453  ;;  %v742_v18 = vmul.f32 %v2452_v12, %v2810_v44 }
 0x938   :  { %v643_v21 = vmul.f32 %v2454_v15, %v2814_v47 }
 0x998   :  { %v745_v13 = vpop.permute.xlu1 %744 }
 0x999   :  { %v747_v14 = vmul.f32 %v2452_v12, %v745_v13 }
 0x99b   :  { %749 = vrot.lane.b32.xlu1 %v747_v14, %s2605_s15  ;;  %v646_v16 = vpop.permute.xlu0 %645  ;;  %v1858_v14 = vld [vmem:[%s3065_s0 + $0xa] sm:$0x3] }
 0x99c   :  { %v648_v17 = vmul.f32 %v2454_v15, %v646_v16 }
 0x99e   :  { %650 = vrot.lane.b32.xlu0 %v648_v17, %s2605_s15 }
 0xa0d   :  { %v750_v19 = vpop.permute.xlu1 %749 }
 0xa0e   :  { %v2849_v20 = vadd.f32 %v750_v19, %v742_v18 }
 0xa10   :  { %2455 = vtanh.f32 %v2849_v20  ;;  %v651_v22 = vpop.permute.xlu0 %650 }
 0xa11   :  { %v2853_v23 = vadd.f32 %v651_v22, %v643_v21 }
 0xa13   :  { %2457 = vtanh.f32 %v2853_v23 }
 0xa1a   :  { %v2456_v24 = vpop.eup %2455 }
 0xa1b   :  { %755 = vrot.lane.b32.xlu1 %v2456_v24, %s2604_s14 }
 0xa1d   :  { %v2458_v26 = vpop.eup %2457 }
 0xa1e   :  { %656 = vrot.lane.b32.xlu0 %v2458_v26, %s2604_s14 }
 0xa8d   :  { %v756_v28 = vpop.permute.xlu1 %755 }
 0xa8e   :  { %v758_v29 = vmul.f32 %v2452_v12, %v756_v28 }
 0xa90   :  { %760 = vrot.lane.b32.xlu0 %v758_v29, %s2605_s15  ;;  %v657_v31 = vpop.permute.xlu0 %656 }
 0xa91   :  { %v659_v32 = vmul.f32 %v2454_v15, %v657_v31 }
 0xa93   :  { %764 = vrot.lane.b32.xlu1 %v659_v32, %s2604_s14 }
 0xb02   :  { %v761_v33 = vpop.permute.xlu0 %760 }
 0xb03   :  { %2121 = vmatmul.mubr.msk.f32.vlgmr.msra.gmra.mrb[6].mxu1 %vm48_vm1, %v761_v33 }
 0xb04   :  { %2323 = vmatpush3.bf16.msra.mxu1 %v2706_v25  ;;  %2139 = vmatprep.mubr.msk.f32.mxu1 %vm2602_vm0, %v2603_v6 }
 0xb05   :  { %2324 = vmatprep.subr.bf16.mxu1 %v2601_v3  ;;  %v765_v35 = vpop.permute.xlu1 %764 }
 0xb06   :  { %v767_v36 = vsel %vm48_vm1, %v761_v33, %v765_v35 }
 0xb07   :  { %2110 = vmatmul.mubr.msk.f32.vlgmr.msra.gmra.mrb[8].mxu0 %vm152_vm2, %v767_v36 }
 0xb08   :  { %2326 = vmatpush3.bf16.msra.mxu1 %v2712_v27  ;;  %2335 = vmatpush3.bf16.msra.mxu0 %v2666_v4 }
 0xb09   :  { %2327 = vmatprep.subr.bf16.mxu1 %v2601_v3  ;;  %2336 = vmatprep.subr.bf16.mxu0 %v2601_v3 }
 0xb0a   :  { %2150 = vmatprep.mubr.msk.f32.mxu0 %vm2602_vm0, %v2603_v6 }
 0xb0c   :  { %2329 = vmatpush3.bf16.msra.mxu1 %v2722_v30  ;;  %2338 = vmatpush3.bf16.msra.mxu0 %v2677_v7 }
 0xb0d   :  { %2330 = vmatprep.subr.bf16.mxu1 %v2601_v3  ;;  %2339 = vmatprep.subr.bf16.mxu0 %v2601_v3 }
 0xb10   :  { %2332 = vmatpush3.bf16.msra.mxu1 %v2733_v34 }
 0xb11   :  { %2351 = vmatprep.subr.bf16.mxu1 %v2601_v3 }
 0xbd6   :  { %v935_v38 = vpop.f32.mrb[6].mxu1 }
 0xbd7   :  { %v939_v39 = vadd.f32 %v1853_v37, %v935_v38  ;;  %v2122_v41 = vpop.f32.mrb[7].mxu1 }
 0xbd9   :  { %2459 = vtanh.f32 %v939_v39  ;;  %v1855_v47 = vmul.f32 -1.442695, %v939_v39 }
 0xbda   :  { %v837_v42 = vpop.f32.mrb[8].mxu0 }
 0xbdb   :  { %v838_v43 = vadd.f32 %v2764_v40, %v837_v42  ;;  %v2111_v44 = vpop.f32.mrb[9].mxu0 }
 0xbdd   :  { %2461 = vtanh.f32 %v838_v43  ;;  %v1852_v48 = vmul.f32 -1.442695, %v838_v43 }
 0xbde   :  { %2463 = vpow2.f32 %v1855_v47 }
 0xbdf   :  { %2465 = vpow2.f32 %v1852_v48 }
 0xbe3   :  { %v2460_v45 = vpop.eup %2459 }
 0xbe4   :  { %949 = vrot.lane.b32.xlu1 %v2460_v45, %s2604_s14 }
 0xbe7   :  { %v2462_v46 = vpop.eup %2461 }
 0xbe8   :  { %850 = vrot.lane.b32.xlu0 %v2462_v46, %s2604_s14  ;;  %v2464_v49 = vpop.eup %2463 }
 0xbe9   :  { %v943_v50 = vadd.f32 1.0, %v2464_v49  ;;  %v2466_v51 = vpop.eup %2465 }
 0xbea   :  { %v844_v52 = vadd.f32 1.0, %v2466_v51 }
 0xbeb   :  { %2467 = vrcp.f32 %v943_v50 }
 0xbec   :  { %2469 = vrcp.f32 %v844_v52 }
 0xbf5   :  { %v2468_v53 = vpop.eup %2467 }
 0xbf6   :  { %v2470_v56 = vpop.eup %2469  ;;  %v947_v59 = vmul.f32 %v2468_v53, %v2849_v20 }
 0xbf7   :  { %v848_v62 = vmul.f32 %v2470_v56, %v2853_v23 }
 0xc56   :  { %v950_v54 = vpop.permute.xlu1 %949 }
 0xc57   :  { %v952_v55 = vmul.f32 %v2468_v53, %v950_v54 }
 0xc59   :  { %954 = vrot.lane.b32.xlu1 %v952_v55, %s2605_s15 }
 0xc5a   :  { %v851_v57 = vpop.permute.xlu0 %850 }
 0xc5b   :  { %v853_v58 = vmul.f32 %v2470_v56, %v851_v57 }
 0xc5d   :  { %855 = vrot.lane.b32.xlu0 %v853_v58, %s2605_s15 }
 0xccb   :  { %v955_v60 = vpop.permute.xlu1 %954 }
 0xccc   :  { %v2888_v61 = vadd.f32 %v955_v60, %v947_v59 }
 0xcce   :  { %2471 = vtanh.f32 %v2888_v61 }
 0xccf   :  { %v856_v63 = vpop.permute.xlu0 %855 }
 0xcd0   :  { %v2892_v0 = vadd.f32 %v856_v63, %v848_v62 }
 0xcd2   :  { %2473 = vtanh.f32 %v2892_v0 }
 0xcd8   :  { %v2472_v1 = vpop.eup %2471 }
 0xcd9   :  { %960 = vrot.lane.b32.xlu1 %v2472_v1, %s2604_s14 }
 0xcdc   :  { %v2474_v2 = vpop.eup %2473 }
 0xcdd   :  { %861 = vrot.lane.b32.xlu0 %v2474_v2, %s2604_s14 }
 0xd4b   :  { %v961_v5 = vpop.permute.xlu1 %960 }
 0xd4c   :  { %v963_v8 = vmul.f32 %v2468_v53, %v961_v5 }
 0xd4e   :  { %965 = vrot.lane.b32.xlu0 %v963_v8, %s2605_s15 }
 0xd4f   :  { %v862_v9 = vpop.permute.xlu0 %861 }
 0xd50   :  { %v864_v10 = vmul.f32 %v2470_v56, %v862_v9 }
 0xd52   :  { %969 = vrot.lane.b32.xlu1 %v864_v10, %s2604_s14 }
 0xdc0   :  { %v966_v11 = vpop.permute.xlu0 %965 }
 0xdc1   :  { %2151 = vmatmul.mubr.msk.f32.vlgmr.msra.gmra.mrb[10].mxu0 %vm48_vm1, %v966_v11 }
 0xdc2   :  { %2341 = vmatpush3.bf16.msra.mxu0 %v2706_v25  ;;  %2169 = vmatprep.mubr.msk.f32.mxu0 %vm2602_vm0, %v2603_v6 }
 0xdc3   :  { %2342 = vmatprep.subr.bf16.mxu0 %v2601_v3 }
 0xdc4   :  { %v970_v12 = vpop.permute.xlu1 %969 }
 0xdc5   :  { %v972_v13 = vsel %vm48_vm1, %v966_v11, %v970_v12 }
 0xdc6   :  { %2344 = vmatpush3.bf16.msra.mxu0 %v2712_v27  ;;  %2140 = vmatmul.mubr.msk.f32.vlgmr.msra.gmra.mrb[8].mxu1 %vm152_vm2, %v972_v13 }
 0xdc7   :  { %2345 = vmatprep.subr.bf16.mxu0 %v2601_v3  ;;  %2353 = vmatpush3.bf16.msra.mxu1 %v2666_v4 }
 0xdc8   :  { %2180 = vmatprep.mubr.msk.f32.mxu1 %vm2602_vm0, %v2603_v6  ;;  %2354 = vmatprep.subr.bf16.mxu1 %v2601_v3 }
 0xdca   :  { %2347 = vmatpush3.bf16.msra.mxu0 %v2722_v30 }
 0xdcb   :  { %2348 = vmatprep.subr.bf16.mxu0 %v2601_v3  ;;  %2356 = vmatpush3.bf16.msra.mxu1 %v2677_v7 }
 0xdcc   :  { %2357 = vmatprep.subr.bf16.mxu1 %v2601_v3 }
 0xdce   :  { %2350 = vmatpush3.bf16.msra.mxu0 %v2733_v34 }
 0xdcf   :  { %2369 = vmatprep.subr.bf16.mxu0 %v2601_v3 }
 0xe94   :  { %v1140_v15 = vpop.f32.mrb[10].mxu0 }
 0xe95   :  { %v1144_v16 = vadd.f32 %v1858_v14, %v1140_v15  ;;  %v2152_v17 = vpop.f32.mrb[11].mxu0 }
 0xe97   :  { %2475 = vtanh.f32 %v1144_v16  ;;  %v1860_v23 = vmul.f32 -1.442695, %v1144_v16 }
 0xe99   :  { %v1042_v18 = vpop.f32.mrb[8].mxu1 }
 0xe9a   :  { %v1043_v19 = vadd.f32 %v2764_v40, %v1042_v18  ;;  %v2141_v20 = vpop.f32.mrb[9].mxu1 }
 0xe9c   :  { %2477 = vtanh.f32 %v1043_v19  ;;  %v1857_v24 = vmul.f32 -1.442695, %v1043_v19 }
 0xe9d   :  { %2479 = vpow2.f32 %v1860_v23 }
 0xe9e   :  { %2481 = vpow2.f32 %v1857_v24 }
 0xea1   :  { %v2476_v21 = vpop.eup %2475 }
 0xea2   :  { %1154 = vrot.lane.b32.xlu1 %v2476_v21, %s2604_s14 }
 0xea6   :  { %v2478_v22 = vpop.eup %2477 }
 0xea7   :  { %1055 = vrot.lane.b32.xlu0 %v2478_v22, %s2604_s14  ;;  %v2480_v26 = vpop.eup %2479 }
 0xea8   :  { %v1148_v28 = vadd.f32 1.0, %v2480_v26  ;;  %v2482_v29 = vpop.eup %2481 }
 0xea9   :  { %v1049_v31 = vadd.f32 1.0, %v2482_v29 }
 0xeaa   :  { %2483 = vrcp.f32 %v1148_v28 }
 0xeab   :  { %2485 = vrcp.f32 %v1049_v31 }
 0xeb4   :  { %v2484_v32 = vpop.eup %2483 }
 0xeb5   :  { %v2486_v36 = vpop.eup %2485  ;;  %v1152_v39 = vmul.f32 %v2484_v32, %v2888_v61 }
 0xeb6   :  { %v1053_v43 = vmul.f32 %v2486_v36, %v2892_v0 }
 0xf14   :  { %v1155_v33 = vpop.permute.xlu1 %1154 }
 0xf15   :  { %v1157_v35 = vmul.f32 %v2484_v32, %v1155_v33 }
 0xf17   :  { %1159 = vrot.lane.b32.xlu1 %v1157_v35, %s2605_s15 }
 0xf19   :  { %v1056_v37 = vpop.permute.xlu0 %1055 }
 0xf1a   :  { %v1058_v38 = vmul.f32 %v2486_v36, %v1056_v37 }
 0xf1c   :  { %1060 = vrot.lane.b32.xlu0 %v1058_v38, %s2605_s15 }
 0xf89   :  { %v1160_v41 = vpop.permute.xlu1 %1159 }
 0xf8a   :  { %v2927_v42 = vadd.f32 %v1160_v41, %v1152_v39 }
 0xf8c   :  { %2487 = vtanh.f32 %v2927_v42 }
 0xf8e   :  { %v1061_v44 = vpop.permute.xlu0 %1060 }
 0xf8f   :  { %v2931_v45 = vadd.f32 %v1061_v44, %v1053_v43 }
 0xf91   :  { %2489 = vtanh.f32 %v2931_v45 }
 0xf96   :  { %v2488_v46 = vpop.eup %2487 }
 0xf97   :  { %1165 = vrot.lane.b32.xlu1 %v2488_v46, %s2604_s14 }
 0xf9b   :  { %v2490_v47 = vpop.eup %2489 }
 0xf9c   :  { %1066 = vrot.lane.b32.xlu0 %v2490_v47, %s2604_s14 }
0x1009   :  { %v1166_v48 = vpop.permute.xlu1 %1165 }
0x100a   :  { %v1168_v49 = vmul.f32 %v2484_v32, %v1166_v48 }
0x100c   :  { %1170 = vrot.lane.b32.xlu0 %v1168_v49, %s2605_s15 }
0x100e   :  { %v1067_v50 = vpop.permute.xlu0 %1066 }
0x100f   :  { %v1069_v51 = vmul.f32 %v2486_v36, %v1067_v50 }
0x1011   :  { %1174 = vrot.lane.b32.xlu1 %v1069_v51, %s2604_s14 }
0x107e   :  { %v1171_v52 = vpop.permute.xlu0 %1170 }
0x107f   :  { %2181 = vmatmul.mubr.msk.f32.vlgmr.msra.gmra.mrb[10].mxu1 %vm48_vm1, %v1171_v52 }
0x1080   :  { %2359 = vmatpush3.bf16.msra.mxu1 %v2706_v25  ;;  %2199 = vmatprep.mubr.msk.f32.mxu1 %vm2602_vm0, %v2603_v6 }
0x1081   :  { %2360 = vmatprep.subr.bf16.mxu1 %v2601_v3 }
0x1083   :  { %v1175_v53 = vpop.permute.xlu1 %1174 }
0x1084   :  { %2362 = vmatpush3.bf16.msra.mxu1 %v2712_v27  ;;  %v1177_v54 = vsel %vm48_vm1, %v1171_v52, %v1175_v53 }
0x1085   :  { %2363 = vmatprep.subr.bf16.mxu1 %v2601_v3  ;;  %2170 = vmatmul.mubr.msk.f32.vlgmr.msra.gmra.mrb[12].mxu0 %vm152_vm2, %v1177_v54 }
0x1086   :  { %2371 = vmatpush3.bf16.msra.mxu0 %v2666_v4  ;;  %2210 = vmatprep.mubr.msk.f32.mxu0 %vm2602_vm0, %v2603_v6  ;;  %v1863_v4 = vld [vmem:[%s3065_s0 + $0xc] sm:$0x3] }
0x1087   :  { %2372 = vmatprep.subr.bf16.mxu0 %v2601_v3 }
0x1088   :  { %2365 = vmatpush3.bf16.msra.mxu1 %v2722_v30 }
0x1089   :  { %2366 = vmatprep.subr.bf16.mxu1 %v2601_v3 }
0x108a   :  { %2374 = vmatpush3.bf16.msra.mxu0 %v2677_v7 }
0x108b   :  { %2375 = vmatprep.subr.bf16.mxu0 %v2601_v3 }
0x108c   :  { %2368 = vmatpush3.bf16.msra.mxu1 %v2733_v34 }
0x108d   :  { %2387 = vmatprep.subr.bf16.mxu1 %v2601_v3 }
0x1152   :  { %v1345_v55 = vpop.f32.mrb[10].mxu1 }
0x1153   :  { %v1349_v56 = vadd.f32 %v1863_v4, %v1345_v55  ;;  %v2182_v57 = vpop.f32.mrb[11].mxu1 }
0x1155   :  { %2491 = vtanh.f32 %v1349_v56  ;;  %v1865_v62 = vmul.f32 -1.442695, %v1349_v56 }
0x1158   :  { %v1247_v58 = vpop.f32.mrb[12].mxu0 }
0x1159   :  { %v1248_v59 = vadd.f32 %v2764_v40, %v1247_v58  ;;  %v2171_v60 = vpop.f32.mrb[13].mxu0 }
0x115b   :  { %2493 = vtanh.f32 %v1248_v59  ;;  %v1862_v63 = vmul.f32 -1.442695, %v1248_v59 }
0x115c   :  { %2495 = vpow2.f32 %v1865_v62 }
0x115d   :  { %2497 = vpow2.f32 %v1862_v63 }
0x115f   :  { %v2492_v7 = vpop.eup %2491 }
0x1160   :  { %1359 = vrot.lane.b32.xlu1 %v2492_v7, %s2604_s14 }
0x1165   :  { %v2494_v61 = vpop.eup %2493 }
0x1166   :  { %1260 = vrot.lane.b32.xlu0 %v2494_v61, %s2604_s14  ;;  %v2496_v0 = vpop.eup %2495 }
0x1167   :  { %v1353_v1 = vadd.f32 1.0, %v2496_v0  ;;  %v2498_v2 = vpop.eup %2497 }
0x1168   :  { %v1254_v5 = vadd.f32 1.0, %v2498_v2 }
0x1169   :  { %2499 = vrcp.f32 %v1353_v1 }
0x116a   :  { %2501 = vrcp.f32 %v1254_v5 }
0x1173   :  { %v2500_v8 = vpop.eup %2499 }
0x1174   :  { %v2502_v11 = vpop.eup %2501  ;;  %v1357_v14 = vmul.f32 %v2500_v8, %v2927_v42 }
0x1175   :  { %v1258_v17 = vmul.f32 %v2502_v11, %v2931_v45 }
0x11d2   :  { %v1360_v9 = vpop.permute.xlu1 %1359 }
0x11d3   :  { %v1362_v10 = vmul.f32 %v2500_v8, %v1360_v9 }
0x11d5   :  { %1364 = vrot.lane.b32.xlu1 %v1362_v10, %s2605_s15 }
0x11d8   :  { %v1261_v12 = vpop.permute.xlu0 %1260 }
0x11d9   :  { %v1263_v13 = vmul.f32 %v2502_v11, %v1261_v12 }
0x11db   :  { %1265 = vrot.lane.b32.xlu0 %v1263_v13, %s2605_s15 }
0x1247   :  { %v1365_v15 = vpop.permute.xlu1 %1364 }
0x1248   :  { %v1367_v16 = vadd.f32 %v1365_v15, %v1357_v14 }
0x124a   :  { %2503 = vtanh.f32 %v1367_v16 }
0x124d   :  { %v1266_v18 = vpop.permute.xlu0 %1265 }
0x124e   :  { %v1268_v19 = vadd.f32 %v1266_v18, %v1258_v17  ;;  %v1706_v17 = vld [vmem:[%s3069_s4 + $0x10] sm:$0xff] }
0x1250   :  { %2505 = vtanh.f32 %v1268_v19 }
0x1254   :  { %v2504_v20 = vpop.eup %2503 }
0x1255   :  { %1370 = vrot.lane.b32.xlu1 %v2504_v20, %s2604_s14 }
0x125a   :  { %v2506_v21 = vpop.eup %2505 }
0x125b   :  { %1271 = vrot.lane.b32.xlu0 %v2506_v21, %s2604_s14 }
0x12c7   :  { %v1371_v22 = vpop.permute.xlu1 %1370 }
0x12c8   :  { %v1373_v23 = vmul.f32 %v2500_v8, %v1371_v22 }
0x12ca   :  { %1375 = vrot.lane.b32.xlu0 %v1373_v23, %s2605_s15 }
0x12cd   :  { %v1272_v24 = vpop.permute.xlu0 %1271 }
0x12ce   :  { %v1274_v26 = vmul.f32 %v2502_v11, %v1272_v24 }
0x12d0   :  { %1379 = vrot.lane.b32.xlu1 %v1274_v26, %s2604_s14 }
0x133c   :  { %v1376_v28 = vpop.permute.xlu0 %1375 }
0x133d   :  { %2211 = vmatmul.mubr.msk.f32.vlgmr.msra.gmra.mrb[14].mxu0 %vm48_vm1, %v1376_v28 }
0x133e   :  { %2377 = vmatpush3.bf16.msra.mxu0 %v2706_v25  ;;  %2229 = vmatprep.mubr.msk.f32.mxu0 %vm2602_vm0, %v2603_v6  ;;  %v1868_v25 = vld [vmem:[%s3065_s0 + $0xe] sm:$0x3] }
0x133f   :  { %2378 = vmatprep.subr.bf16.mxu0 %v2601_v3 }
0x1342   :  { %2380 = vmatpush3.bf16.msra.mxu0 %v2712_v27  ;;  %v1380_v29 = vpop.permute.xlu1 %1379 }
0x1343   :  { %2381 = vmatprep.subr.bf16.mxu0 %v2601_v3  ;;  %v1382_v31 = vsel %vm48_vm1, %v1376_v28, %v1380_v29 }
0x1344   :  { %2200 = vmatmul.mubr.msk.f32.vlgmr.msra.gmra.mrb[12].mxu1 %vm152_vm2, %v1382_v31 }
0x1345   :  { %2240 = vmatprep.mubr.msk.f32.mxu1 %vm2602_vm0, %v2603_v6 }
0x1346   :  { %2383 = vmatpush3.bf16.msra.mxu0 %v2722_v30 }
0x1347   :  { %2384 = vmatprep.subr.bf16.mxu0 %v2601_v3 }
0x134a   :  { %2386 = vmatpush3.bf16.msra.mxu0 %v2733_v34 }
0x1410   :  { %v1550_v27 = vpop.f32.mrb[14].mxu0 }
0x1411   :  { %v1554_v32 = vadd.f32 %v1868_v25, %v1550_v27  ;;  %v2212_v33 = vpop.f32.mrb[15].mxu0 }
0x1413   :  { %2507 = vtanh.f32 %v1554_v32  ;;  %v1870_v34 = vmul.f32 -1.442695, %v1554_v32 }
0x1417   :  { %v1452_v35 = vpop.f32.mrb[12].mxu1 }
0x1418   :  { %v1453_v36 = vadd.f32 %v2764_v40, %v1452_v35  ;;  %v2201_v37 = vpop.f32.mrb[13].mxu1 }
0x141a   :  { %2509 = vtanh.f32 %v1453_v36  ;;  %v1867_v38 = vmul.f32 -1.442695, %v1453_v36 }
0x141b   :  { %2511 = vpow2.f32 %v1870_v34 }
0x141c   :  { %2513 = vpow2.f32 %v1867_v38 }
0x141d   :  { %v2508_v30 = vpop.eup %2507 }
0x141e   :  { %1564 = vrot.lane.b32.xlu1 %v2508_v30, %s2604_s14 }
0x1424   :  { %v2510_v6 = vpop.eup %2509 }
0x1425   :  { %1465 = vrot.lane.b32.xlu0 %v2510_v6, %s2604_s14  ;;  %v2512_v39 = vpop.eup %2511 }
0x1426   :  { %v1558_v41 = vadd.f32 1.0, %v2512_v39  ;;  %v2514_v42 = vpop.eup %2513 }
0x1427   :  { %v1459_v43 = vadd.f32 1.0, %v2514_v42 }
0x1428   :  { %2515 = vrcp.f32 %v1558_v41 }
0x1429   :  { %2517 = vrcp.f32 %v1459_v43 }
0x1432   :  { %v2516_v44 = vpop.eup %2515 }
0x1433   :  { %v2518_v47 = vpop.eup %2517  ;;  %v1562_v50 = vmul.f32 %v2516_v44, %v1367_v16  ;;  %v1705_v16 = vld [vmem:[%s3069_s4 + $0x8] sm:$0xff] }
0x1434   :  { %v1463_v53 = vmul.f32 %v2518_v47, %v1268_v19  ;;  %v1707_v19 = vld [vmem:[%s3069_s4 + $0x18] sm:$0xff] }
0x1435   :  { %v2391_v20 = vpack.c.bf16 %v1707_v19, %v1706_v17 }
0x1490   :  { %v1565_v45 = vpop.permute.xlu1 %1564 }
0x1491   :  { %v1567_v46 = vmul.f32 %v2516_v44, %v1565_v45 }
0x1493   :  { %1569 = vrot.lane.b32.xlu1 %v1567_v46, %s2605_s15 }
0x1497   :  { %v1466_v48 = vpop.permute.xlu0 %1465 }
0x1498   :  { %v1468_v49 = vmul.f32 %v2518_v47, %v1466_v48 }
0x149a   :  { %1470 = vrot.lane.b32.xlu0 %v1468_v49, %s2605_s15 }
0x1505   :  { %v1570_v51 = vpop.permute.xlu1 %1569 }
0x1506   :  { %v1572_v52 = vadd.f32 %v1570_v51, %v1562_v50 }
0x1508   :  { %2519 = vtanh.f32 %v1572_v52 }
0x150c   :  { %v1471_v54 = vpop.permute.xlu0 %1470 }
0x150d   :  { %v1473_v4 = vadd.f32 %v1471_v54, %v1463_v53 }
0x150f   :  { %2521 = vtanh.f32 %v1473_v4 }
0x1512   :  { %v2520_v55 = vpop.eup %2519 }
0x1513   :  { %1575 = vrot.lane.b32.xlu1 %v2520_v55, %s2604_s14 }
0x1519   :  { %v2522_v56 = vpop.eup %2521 }
0x151a   :  { %1476 = vrot.lane.b32.xlu0 %v2522_v56, %s2604_s14 }
0x1585   :  { %v1576_v57 = vpop.permute.xlu1 %1575 }
0x1586   :  { %v1578_v58 = vmul.f32 %v2516_v44, %v1576_v57 }
0x1588   :  { %1580 = vrot.lane.b32.xlu0 %v1578_v58, %s2605_s15 }
0x158c   :  { %v1477_v59 = vpop.permute.xlu0 %1476 }
0x158d   :  { %v1479_v60 = vmul.f32 %v2518_v47, %v1477_v59 }
0x158f   :  { %1584 = vrot.lane.b32.xlu1 %v1479_v60, %s2604_s14 }
0x15fa   :  { %v1581_v7 = vpop.permute.xlu0 %1580 }
0x15fb   :  { %1686 = vst.msk [vmem:[#allocation4] sm:$0x3] %vm1685_vm3, %v1581_v7 }
0x1601   :  { %v1585_v61 = vpop.permute.xlu1 %1584 }
0x1602   :  { %v1587_v62 = vsel %vm48_vm1, %v1581_v7, %v1585_v61 }
0x1603   :  { %2230 = vmatmul.mubr.msk.f32.vlgmr.msra.gmra.mrb[16].mxu0 %vm152_vm2, %v1587_v62 }
0x16d6   :  { %v1657_v63 = vpop.f32.mrb[16].mxu0 }
0x16d7   :  { %v1658_v0 = vadd.f32 %v2764_v40, %v1657_v63  ;;  %v2231_v1 = vpop.f32.mrb[17].mxu0  ;;  %v1704_v40 = vld [vmem:[%s3069_s4] sm:$0xff]  ;;  %s2607_s4 = smov [#allocation4]  }
0x16d8   :  { %v2388_v18 = vpack.c.bf16 %v1705_v16, %v1704_v40 }
0x16d9   :  { %2523 = vtanh.f32 %v1658_v0  ;;  %v1872_v5 = vmul.f32 -1.442695, %v1658_v0 }
0x16da   :  { %2389 = vmatpush3.bf16.msra.mxu1 %v2388_v18 }
0x16db   :  { %2525 = vpow2.f32 %v1872_v5  ;;  %2390 = vmatprep.subr.bf16.mxu1 %v2601_v3 }
0x16de   :  { %2392 = vmatpush3.bf16.msra.mxu1 %v2391_v20 }
0x16e3   :  { %v2524_v2 = vpop.eup %2523 }
0x16e4   :  { %1670 = vrot.lane.b32.xlu0 %v2524_v2, %s2604_s14 }
0x16e5   :  { %v2526_v8 = vpop.eup %2525 }
0x16e6   :  { %v1664_v9 = vadd.f32 1.0, %v2526_v8 }
0x16e8   :  { %2527 = vrcp.f32 %v1664_v9 }
0x16f2   :  { %v2528_v10 = vpop.eup %2527 }
0x16f3   :  { %v1668_v13 = vmul.f32 %v2528_v10, %v1473_v4 }
0x1756   :  { %v1671_v11 = vpop.permute.xlu0 %1670 }
0x1757   :  { %v1673_v12 = vmul.f32 %v2528_v10, %v1671_v11 }
0x1759   :  { %1675 = vrot.lane.b32.xlu1 %v1673_v12, %s2605_s15 }
0x17cb   :  { %v1676_v14 = vpop.permute.xlu1 %1675 }
0x17cc   :  { %v1678_v15 = vadd.f32 %v1676_v14, %v1668_v13 }
0x17ce   :  { %2529 = vtanh.f32 %v1678_v15 }
0x17d8   :  { %v2530_v21 = vpop.eup %2529 }
0x17d9   :  { %1681 = vrot.lane.b32.xlu0 %v2530_v21, %s2604_s14  ;;  %s1804_s14 = sshll.u32 %s2607_s4, 4  ;;  %s1805_s14 = int_to_ptr.vmem [resolvable:$true] %s1804_s14 }
0x17da   :  { %s2531_s10 = scalar_lea.vmem %s1805_s14, 64  ;;  %p2536_p1 = scmp.lt.s32.totalorder %s1805_s14, %s1805_s14 }
0x17db   :  { %p2532_p0 = scmp.ne.s32.totalorder %s1805_s14, %s2531_s10  ;;  %p2537_p2 = scmp.lt.s32.totalorder %s2531_s10, %s2531_s10 }
0x17dd   :  { %1694 = vrot.lane.b32.xlu0 %v1572_v52, %s2606_s2  ;;  %p2538_p3 = por %p2537_p2, %p2536_p1 }
0x17df   :  { %p2539_p4 = pnand %p2538_p3, %p2532_p0 }
0x184b   :  { %v1682_v22 = vpop.permute.xlu0 %1681 }
0x184c   :  { %v1684_v23 = vmul.f32 %v2528_v10, %v1682_v22 }
0x184e   :  { %1688 = vrot.lane.b32.xlu1 %v1684_v23, %s2605_s15 }
0x184f   :  { %v1695_v24 = vpop.permute.xlu0 %1694 }
0x1850   :  { %1697 = vst.msk [vmem:[#allocation6] sm:$0x3] %vm1685_vm3, %v1695_v24 }
0x1852   :  { %1699 = vrot.lane.b32.xlu1 %v1678_v15, %s2606_s2 }
0x18c0   :  { %v1689_v26 = vpop.permute.xlu1 %1688 }
0x18c1   :  { %1692 = vst.msk [vmem:[#allocation4 + $0x2] sm:$0x3] %vm1685_vm3, %v1689_v26  ;;  %2241 = vmatmul.mubr.msk.f32.vlgmr.msra.gmra.mrb[14].mxu1 %vm48_vm1, %v1689_v26 }
0x18c4   :  { %v1700_v3 = vpop.permute.xlu1 %1699 }
0x18c5   :  { %1703 = vst.msk [vmem:[#allocation6 + $0x2] sm:$0x3] %vm1685_vm3, %v1700_v3 }
0x18c6   :  { %2542 = shalt.err (!%p2539_p4)
}
0x18c7   :  { %s2543_s3 = scalar_lea.hbm %s3072_s7, 64 }
0x18c8   :  { %p2544_p5 = scmp.ne.s32.totalorder %s3072_s7, %s2543_s3  ;;  %p2547_p6 = scmp.lt.u32.totalorder %s2543_s3, %s3072_s7 }
0x18ca   :  { %p2549_p7 = pnand %p2547_p6, %p2544_p5 }
0x18cc   :  { %2552 = shalt.err (!%p2549_p7)
}
0x18cd   :  { %s2608_s18 = smov 2   ;;  %s2609_s21 = smov [#allocation6]  }
0x18ce   :  { %1810 = dma.vmem_to_hbm [thread:$0]  %s1805_s14, 64, %s3072_s7, [#allocation5], %s2605_s15, %s2605_s15, %s2608_s18  }
0x18cf   :  { %s1816_s22 = sshll.u32 %s2609_s21, 4  ;;  %s1817_s22 = int_to_ptr.vmem [resolvable:$true] %s1816_s22 }
0x18d0   :  { %s2553_s23 = scalar_lea.vmem %s1817_s22, 64  ;;  %p2558_p9 = scmp.lt.s32.totalorder %s1817_s22, %s1817_s22 }
0x18d1   :  { %p2554_p8 = scmp.ne.s32.totalorder %s1817_s22, %s2553_s23  ;;  %p2559_p10 = scmp.lt.s32.totalorder %s2553_s23, %s2553_s23 }
0x18d3   :  { %p2560_p11 = por %p2559_p10, %p2558_p9 }
0x18d5   :  { %p2561_p12 = pnand %p2560_p11, %p2554_p8 }
0x18d7   :  { %2564 = shalt.err (!%p2561_p12)
}
0x18d8   :  { %s2565_s25 = scalar_lea.hbm %s3073_s8, 64 }
0x18d9   :  { %p2566_p13 = scmp.ne.s32.totalorder %s3073_s8, %s2565_s25  ;;  %p2569_p0 = scmp.lt.u32.totalorder %s2565_s25, %s3073_s8 }
0x18db   :  { %p2571_p1 = pnand %p2569_p0, %p2566_p13 }
0x18dd   :  { %2574 = shalt.err (!%p2571_p1)
}
0x18de   :  { %1822 = dma.vmem_to_hbm [thread:$0]  %s1817_s22, 64, %s3073_s8, [#allocation5], %s2605_s15, %s2605_s15, %s2608_s18   ;;  %vm1787_vm4 = vcmask 517120  }
0x18df   :  { %v1873_v28 = vld [vmem:[%s3070_s5] ss:$0 sm:$0xff]  ;;  %s2610_s4 = smov [#allocation2]  }
0x18e0   :  { %s1795_s14 = sshll.u32 %s2610_s4, 4  ;;  %s1796_s14 = int_to_ptr.vmem [resolvable:$true] %s1795_s14 }
0x18e1   :  { %s2575_s10 = scalar_lea.vmem %s1796_s14, 32  ;;  %p2580_p3 = scmp.lt.s32.totalorder %s1796_s14, %s1796_s14 }
0x18e2   :  { %p2576_p2 = scmp.ne.s32.totalorder %s1796_s14, %s2575_s10  ;;  %p2581_p4 = scmp.lt.s32.totalorder %s2575_s10, %s2575_s10 }
0x18e4   :  { %p2582_p5 = por %p2581_p4, %p2580_p3 }
0x18e6   :  { %p2583_p6 = pnand %p2582_p5, %p2576_p2 }
0x1994   :  { %v1783_v29 = vpop.f32.mrb[14].mxu1 }
0x1995   :  { %v1784_v31 = vadd.f32 %v1873_v28, %v1783_v29  ;;  %v2242_v25 = vpop.f32.mrb[15].mxu1 }
0x1997   :  { %1788 = vst.msk [vmem:[#allocation2] sm:$0x3] %vm1787_vm4, %v1784_v31 }
0x1998   :  { %2586 = shalt.err (!%p2583_p6)
}
0x1999   :  { %s2587_s11 = scalar_lea.hbm %s3071_s6, 32 }
0x199a   :  { %p2588_p7 = scmp.ne.s32.totalorder %s3071_s6, %s2587_s11  ;;  %p2591_p8 = scmp.lt.u32.totalorder %s2587_s11, %s3071_s6 }
0x199c   :  { %p2593_p9 = pnand %p2591_p8, %p2588_p7 }
0x199e   :  { %2596 = shalt.err (!%p2593_p9)
}
0x199f   :  { %1798 = dma.vmem_to_hbm [thread:$0]  %s1796_s14, 32, %s3071_s6, [#allocation3]  }
0x19a0   :  { %2597 = dma.done.wait [#allocation3], 32  }
0x19a1   :  { %2598 = vsyncadd [#allocation3], 4294967264 }
0x19a2   :  { %2599 = dma.done.wait [#allocation5], 128  }
0x19a3   :  { %2600 = vsyncadd [#allocation5], 4294967168 }
0x19a4   :  { %1832 = vsyncpa [#allocation3], 1 }
0x19a5   :  { %1833 = vsyncpa [#allocation5], 1 }

</bundles_post_ra>
